<compile_context>
chip_gen: v7x
topology: tpu7x:2x2x1
jax: 0.10.0
libtpu: 0.0.40
codegen_flags: <defaults>
</compile_context>

<pallas_src>
import functools
import math

import jax
import jax.numpy as jnp
from jax.experimental import pallas as pl
from jax.experimental.pallas import tpu as pltpu


# ----------------------------- kernel ----------------------------------------


def _layernorm(x, gamma, beta, eps=1e-5):
    # x: (M, E) f32; gamma/beta: (1, E).  Biased variance (nn.LayerNorm).
    mean = jnp.mean(x, axis=-1, keepdims=True)
    xc = x - mean
    var = jnp.mean(xc * xc, axis=-1, keepdims=True)
    return xc * jax.lax.rsqrt(var + eps) * gamma + beta


def encoder_stack_kernel(
    x_hbm,                         # (B, S, E) f32, memory_space=pl.ANY (HBM)
    wqkv_ref, bqkv_ref, wo_ref, bo_ref,
    g1_ref, be1_ref,
    w1_ref, b1_ref, w2_ref, b2_ref,
    g2_ref, be2_ref,
    o_ref,                         # (Bt, S, E) output block
    act_ref,                       # VMEM scratch (Bt, S, E) f32: residual stream
    copy_sem,                      # DMA semaphore for the one-time x fetch
    *, heads: int,
):
    b = pl.program_id(0)
    layer = pl.program_id(1)
    Bt, S, E = act_ref.shape
    M = Bt * S
    dh = E // heads
    scale = 1.0 / (dh ** 0.5)
    matmul_dtype = wqkv_ref.dtype

    # Layer 0: pull this batch tile's activations straight from HBM into the
    # resident scratch (x is not a pipelined VMEM block -> no dead 2x(Bt,S,E)
    # double buffer held for the remaining L-1 layer steps).
    @pl.when(layer == 0)
    def _():
        cp = pltpu.make_async_copy(x_hbm.at[pl.ds(b * Bt, Bt)], act_ref, copy_sem)
        cp.start()
        cp.wait()

    x = act_ref[...].reshape(M, E)                 # leading-dim merge only, f32
    xm = x.astype(matmul_dtype)

    # ---- fused QKV projection: one (M, E) @ (E, 3E) MXU matmul ----
    qkv = jnp.dot(xm, wqkv_ref[0], preferred_element_type=jnp.float32) + bqkv_ref[0]
    # Pre-scale Q once (O(M*E), not O(S^2)); cast operands to the MXU dtype.
    q = (qkv[:, 0 * E:1 * E] * scale).astype(matmul_dtype).reshape(Bt, S, E)
    k = qkv[:, 1 * E:2 * E].astype(matmul_dtype).reshape(Bt, S, E)
    v = qkv[:, 2 * E:3 * E].astype(matmul_dtype).reshape(Bt, S, E)

    # ---- attention, per head via lane-aligned slices (no stack/transpose) ----
    ctx_heads = []
    for h in range(heads):
        sl = slice(h * dh, (h + 1) * dh)
        qh, kh, vh = q[:, :, sl], k[:, :, sl], v[:, :, sl]        # (Bt, S, dh)
        # Both operands contract on their last dim; the MXU/compiler handles the
        # transposed ingest — not on the critical lever list at these shapes.
        s_h = jnp.einsum("bqd,bkd->bqk", qh, kh,
                         preferred_element_type=jnp.float32)      # (Bt, S, S) f32
        m_h = jnp.max(s_h, axis=-1, keepdims=True)
        e_h = jnp.exp(s_h - m_h)
        p_h = e_h * pl.reciprocal(jnp.sum(e_h, axis=-1, keepdims=True), approx=True)
        ctx_heads.append(
            jnp.einsum("bqk,bkd->bqd", p_h.astype(matmul_dtype), vh,
                       preferred_element_type=jnp.float32))       # (Bt, S, dh) f32

    # Lane-dim concat of tile-aligned head outputs, then one output projection.
    ctx = jnp.concatenate(ctx_heads, axis=-1).reshape(M, E)        # (M, E) f32
    attn = jnp.dot(ctx.astype(matmul_dtype), wo_ref[0],
                   preferred_element_type=jnp.float32) + bo_ref[0]

    # ---- residual + LayerNorm 1 (dropout == identity at inference) ----
    h1 = _layernorm(x + attn, g1_ref[0], be1_ref[0])

    # ---- feed-forward ----
    f1 = jnp.dot(h1.astype(matmul_dtype), w1_ref[0],
                 preferred_element_type=jnp.float32) + b1_ref[0]
    f1 = jnp.maximum(f1, 0.0)                      # ReLU in f32
    f2 = jnp.dot(f1.astype(matmul_dtype), w2_ref[0],
                 preferred_element_type=jnp.float32) + b2_ref[0]

    # ---- residual + LayerNorm 2 ----
    out = _layernorm(f2 + h1, g2_ref[0], be2_ref[0])

    act_ref[...] = out.reshape(Bt, S, E)           # carried to the next layer

    @pl.when(layer == pl.num_programs(1) - 1)
    def _():
        o_ref[...] = out.reshape(Bt, S, E).astype(o_ref.dtype)


# ----------------------------- wrapper ----------------------------------------


def encoder_forward(x, stacked, heads, *, batch_tile=None):
    """Full Encoder forward.  x: (B, S, E).  stacked: layer-stacked params."""
    x = x.astype(jnp.float32)                      # DMA target scratch is f32
    B, S, E = x.shape
    L = stacked["wqkv"].shape[0]
    F = stacked["w1"].shape[-1]

    assert E % heads == 0
    dh = E // heads
    # Layout assumptions of this kernel (lane-dense slices, sublane-tiled rows).
    assert E % 128 == 0, "embedding_size must be a multiple of 128"
    assert dh % 128 == 0, "head_dim must be a multiple of 128 (layout-only head slicing)"
    assert S % 8 == 0, "sequence length must be a multiple of the sublane tile (8)"

    order = ["wqkv", "bqkv", "wo", "bo", "g1", "be1",
             "w1", "b1", "w2", "b2", "g2", "be2"]
    weight_args = [stacked[name] for name in order]

    # --- generation-aware VMEM budget (v5e/v6e: 128 MiB, v7x: 64 MiB) ---
    try:
        vmem_cap = int(pltpu.get_tpu_info().vmem_capacity_bytes)
    except Exception:  # pragma: no cover - conservative fallback
        vmem_cap = 64 << 20
    headroom = 4 << 20
    vmem_budget = vmem_cap - headroom

    wblk_bytes = sum(int(math.prod(a.shape[1:])) * a.dtype.itemsize
                     for a in weight_args)

    def step_bytes(bt):
        m = bt * S
        act = 4 * m * E                                   # resident f32 residual stream
        outblk = 2 * m * E * 4                            # double-buffered output block
        # in-kernel f32 temporaries: qkv + per-head scores/probs (live one head
        # at a time) + FFN hidden + misc residual/LN temps
        temps = 4 * (m * 3 * E + 3 * bt * S * S + m * F + 6 * m * E)
        return 2 * wblk_bytes + act + outblk + temps + (2 << 20)

    # --- pick the batch tile: grow until the matmul M dim is MXU-friendly
    #     (>=256 for v6e/v7x's 256-wide MXU) or VMEM runs out.  Keeping
    #     B // Bt >= 2 lets v7x's two TensorCores both stay busy. ---
    if batch_tile is None:
        bt = 1
        for cand in range(1, B + 1):
            if B % cand:
                continue
            if step_bytes(cand) > vmem_budget:
                break
            bt = cand
            if cand * S >= 256:
                break
        batch_tile = bt
    Bt = int(batch_tile)
    assert B % Bt == 0

    vmem_limit = int(min(max(step_bytes(Bt), 32 << 20), vmem_budget))

    # Weights: block index follows the layer grid axis -> default double-buffering
    # prefetches layer l+1's slab during layer l's compute.
    def wspec(arr):
        return pl.BlockSpec((1,) + arr.shape[1:], lambda b, l: (l, 0, 0))

    in_specs = [pl.BlockSpec(memory_space=pl.ANY)]        # x stays in HBM
    in_specs += [wspec(a) for a in weight_args]

    flops_per_step = 2 * S * (3 * E * E + 2 * S * E + E * E + 2 * E * F)
    cost = pl.CostEstimate(
        flops=int(B * L * flops_per_step),
        transcendentals=int(B * L * (heads * S * S + 4 * S)),
        bytes_accessed=int((B // Bt) * L * wblk_bytes + 2 * B * S * E * 4),
    )

    kernel = functools.partial(encoder_stack_kernel, heads=heads)

    return pl.pallas_call(
        kernel,
        out_shape=jax.ShapeDtypeStruct((B, S, E), jnp.float32),
        grid_spec=pltpu.PrefetchScalarGridSpec(
            num_scalar_prefetch=0,
            grid=(B // Bt, L),                            # layer axis innermost
            in_specs=in_specs,
            out_specs=pl.BlockSpec((Bt, S, E), lambda b, l: (b, 0, 0)),
            scratch_shapes=[pltpu.VMEM((Bt, S, E), jnp.float32),
                            pltpu.SemaphoreType.DMA],
        ),
        compiler_params=pltpu.CompilerParams(
            dimension_semantics=("parallel", "arbitrary"),
            vmem_limit_bytes=vmem_limit,
        ),
        cost_estimate=cost,
    )(x, *weight_args)


# ----------------------------- param init / packing ---------------------------


def init_encoder_params(key, layers, embedding_size, expansion, scale=0.05):
    E = embedding_size
    F = expansion * E
    layer_params = []
    for _ in range(layers):
        ks = jax.random.split(key, 13)
        key = ks[0]
        layer_params.append({
            # Linear weights stored as (in, out): forward is x @ W + b
            "wq": scale * jax.random.normal(ks[1], (E, E), jnp.float32),
            "bq": scale * jax.random.normal(ks[2], (1, E), jnp.float32),
            "wk": scale * jax.random.normal(ks[3], (E, E), jnp.float32),
            "bk": scale * jax.random.normal(ks[4], (1, E), jnp.float32),
            "wv": scale * jax.random.normal(ks[5], (E, E), jnp.float32),
            "bv": scale * jax.random.normal(ks[6], (1, E), jnp.float32),
            "wo": scale * jax.random.normal(ks[7], (E, E), jnp.float32),
            "bo": scale * jax.random.normal(ks[8], (1, E), jnp.float32),
            "g1": jnp.ones((1, E), jnp.float32),
            "be1": jnp.zeros((1, E), jnp.float32),
            "w1": scale * jax.random.normal(ks[9], (E, F), jnp.float32),
            "b1": scale * jax.random.normal(ks[10], (1, F), jnp.float32),
            "w2": scale * jax.random.normal(ks[11], (F, E), jnp.float32),
            "b2": scale * jax.random.normal(ks[12], (1, E), jnp.float32),
            "g2": jnp.ones((1, E), jnp.float32),
            "be2": jnp.zeros((1, E), jnp.float32),
        })
    return layer_params


def pack_params(layer_params, matmul_dtype=jnp.bfloat16):
    """Fuse QKV, cast big matmul weights to the MXU dtype, stack over layers."""
    def stack(name):
        return jnp.stack([p[name] for p in layer_params])

    wqkv = jnp.stack([jnp.concatenate([p["wq"], p["wk"], p["wv"]], axis=1)
                      for p in layer_params])
    bqkv = jnp.stack([jnp.concatenate([p["bq"], p["bk"], p["bv"]], axis=1)
                      for p in layer_params])
    return {
        "wqkv": wqkv.astype(matmul_dtype),
        "bqkv": bqkv,                               # biases / LN params stay f32
        "wo": stack("wo").astype(matmul_dtype),
        "bo": stack("bo"),
        "g1": stack("g1"), "be1": stack("be1"),
        "w1": stack("w1").astype(matmul_dtype), "b1": stack("b1"),
        "w2": stack("w2").astype(matmul_dtype), "b2": stack("b2"),
        "g2": stack("g2"), "be2": stack("be2"),
    }


# ----------------------------- pure-JAX reference -----------------------------


def encoder_reference(x, layer_params, heads):
    def ln(y, g, b, eps=1e-5):
        mu = jnp.mean(y, -1, keepdims=True)
        var = jnp.mean((y - mu) ** 2, -1, keepdims=True)
        return (y - mu) * jax.lax.rsqrt(var + eps) * g + b

    B, S, E = x.shape
    dh = E // heads
    with jax.default_matmul_precision("highest"):
        for p in layer_params:
            q = (x @ p["wq"] + p["bq"]).reshape(B, S, heads, dh)
            k = (x @ p["wk"] + p["bk"]).reshape(B, S, heads, dh)
            v = (x @ p["wv"] + p["bv"]).reshape(B, S, heads, dh)
            scores = jnp.einsum("bqhd,bkhd->bhqk", q, k) / (dh ** 0.5)
            attn = jax.nn.softmax(scores, axis=-1)
            ctx = jnp.einsum("bhqk,bkhd->bqhd", attn, v).reshape(B, S, E)
            ctx = ctx @ p["wo"] + p["bo"]
            h = ln(x + ctx, p["g1"], p["be1"])
            f = jnp.maximum(h @ p["w1"] + p["b1"], 0.0) @ p["w2"] + p["b2"]
            x = ln(f + h, p["g2"], p["be2"])
    return x


# ----------------------------- main -------------------------------------------


if __name__ == "__main__":
    heads = 2
    embedding_size = 256      # lane-dense (multiple of 128); head_dim = 128
    expansion = 2
    layers = 2
    batch, seq = 2, 16

    key = jax.random.PRNGKey(0)
    kx, kp = jax.random.split(key)
    x = jax.random.normal(kx, (batch, seq, embedding_size), jnp.float32)
    layer_params = init_encoder_params(kp, layers, embedding_size, expansion)
    stacked = pack_params(layer_params, matmul_dtype=jnp.bfloat16)

    out = encoder_forward(x, stacked, heads)
    out = jax.block_until_ready(out)
    assert out.shape == (batch, seq, embedding_size)
    assert bool(jnp.all(jnp.isfinite(out)))

    ref = encoder_reference(x, layer_params, heads)
    err = float(jnp.max(jnp.abs(out.astype(jnp.float32) - ref)))
    # bf16 matmul operands + approx reciprocal vs f32 reference: loose tolerance
    # (inference-quality numerics by design; not for training-grade use).
    assert err < 1e-1, f"max abs error vs reference = {err}"
    print("KERNEL_OK")
</pallas_src>

<mosaic_0001>
module attributes {stable_mosaic.version = 11 : i64} {
  func.func @encoder_stack_kernel(%arg0: i32, %arg1: i32, %arg2: memref<2x16x256xf32, #tpu.memory_space<any>>, %arg3: memref<1x256x768xbf16, #tpu.memory_space<vmem>>, %arg4: memref<1x1x768xf32, #tpu.memory_space<vmem>>, %arg5: memref<1x256x256xbf16, #tpu.memory_space<vmem>>, %arg6: memref<1x1x256xf32, #tpu.memory_space<vmem>>, %arg7: memref<1x1x256xf32, #tpu.memory_space<vmem>>, %arg8: memref<1x1x256xf32, #tpu.memory_space<vmem>>, %arg9: memref<1x256x512xbf16, #tpu.memory_space<vmem>>, %arg10: memref<1x1x512xf32, #tpu.memory_space<vmem>>, %arg11: memref<1x512x256xbf16, #tpu.memory_space<vmem>>, %arg12: memref<1x1x256xf32, #tpu.memory_space<vmem>>, %arg13: memref<1x1x256xf32, #tpu.memory_space<vmem>>, %arg14: memref<1x1x256xf32, #tpu.memory_space<vmem>>, %arg15: memref<2x16x256xf32, #tpu.memory_space<vmem>>, %arg16: memref<2x16x256xf32, #tpu.memory_space<vmem>>, %arg17: memref<!tpu.dma_semaphore, #tpu.memory_space<semaphore_mem>>) attributes {dimension_semantics = [#tpu.dimension_semantics<parallel>, #tpu.dimension_semantics<arbitrary>], iteration_bounds = array<i64: 1, 2>, scalar_prefetch = 0 : i64, scratch_operands = 2 : i64, tpu.core_type = #tpu.core_type<tc>, window_params = [{}, {transform_indices = @transform_1, window_bounds = array<i64: 1, 256, 768>}, {transform_indices = @transform_2, window_bounds = array<i64: 1, 1, 768>}, {transform_indices = @transform_3, window_bounds = array<i64: 1, 256, 256>}, {transform_indices = @transform_4, window_bounds = array<i64: 1, 1, 256>}, {transform_indices = @transform_5, window_bounds = array<i64: 1, 1, 256>}, {transform_indices = @transform_6, window_bounds = array<i64: 1, 1, 256>}, {transform_indices = @transform_7, window_bounds = array<i64: 1, 256, 512>}, {transform_indices = @transform_8, window_bounds = array<i64: 1, 1, 512>}, {transform_indices = @transform_9, window_bounds = array<i64: 1, 512, 256>}, {transform_indices = @transform_10, window_bounds = array<i64: 1, 1, 256>}, {transform_indices = @transform_11, window_bounds = array<i64: 1, 1, 256>}, {transform_indices = @transform_12, window_bounds = array<i64: 1, 1, 256>}, {transform_indices = @transform_13, window_bounds = array<i64: 2, 16, 256>}]} {
    %c0_i32 = arith.constant 0 : i32
    %0 = arith.cmpi eq, %arg1, %c0_i32 : i32
    %1 = arith.extui %0 : i1 to i32
    %c0_i32_0 = arith.constant 0 : i32
    %2 = arith.cmpi ne, %1, %c0_i32_0 : i32
    scf.if %2 {
      %c2_i32 = arith.constant 2 : i32
      %139 = arith.muli %arg0, %c2_i32 : i32
      %c0_i32_66 = arith.constant 0 : i32
      %c0_i32_67 = arith.constant 0 : i32
      %140 = tpu.memref_slice %arg2[%139, %c0_i32_66, %c0_i32_67] : memref<2x16x256xf32, #tpu.memory_space<any>> -> memref<2x16x256xf32, #tpu.memory_space<any>>
      tpu.enqueue_dma source(%140 : memref<2x16x256xf32, #tpu.memory_space<any>>) target(%arg16 : memref<2x16x256xf32, #tpu.memory_space<vmem>>) target_semaphore(%arg17 : memref<!tpu.dma_semaphore, #tpu.memory_space<semaphore_mem>>)
      %c0_i32_68 = arith.constant 0 : i32
      %c0_i32_69 = arith.constant 0 : i32
      %141 = tpu.memref_slice %arg2[%139, %c0_i32_68, %c0_i32_69] : memref<2x16x256xf32, #tpu.memory_space<any>> -> memref<2x16x256xf32, #tpu.memory_space<any>>
      tpu.wait_dma2 semaphore(%arg17 : memref<!tpu.dma_semaphore, #tpu.memory_space<semaphore_mem>>) src(%141 : memref<2x16x256xf32, #tpu.memory_space<any>>) dst(%arg16 : memref<2x16x256xf32, #tpu.memory_space<vmem>>)
    } else {
    }
    %c0 = arith.constant 0 : index
    %c0_1 = arith.constant 0 : index
    %c0_2 = arith.constant 0 : index
    %3 = vector.load %arg16[%c0, %c0_1, %c0_2] : memref<2x16x256xf32, #tpu.memory_space<vmem>>, vector<2x16x256xf32>
    %4 = vector.shape_cast %3 : vector<2x16x256xf32> to vector<32x256xf32>
    %5 = arith.truncf %4 : vector<32x256xf32> to vector<32x256xbf16>
    %c0_3 = arith.constant 0 : index
    %c0_4 = arith.constant 0 : index
    %c0_5 = arith.constant 0 : index
    %6 = vector.load %arg3[%c0_3, %c0_4, %c0_5] : memref<1x256x768xbf16, #tpu.memory_space<vmem>>, vector<1x256x768xbf16>
    %7 = vector.shape_cast %6 : vector<1x256x768xbf16> to vector<256x768xbf16>
    %cst = arith.constant dense<0.000000e+00> : vector<32x768xf32>
    %8 = tpu.matmul %5, %7, %cst {dimension_numbers = #tpu.dot_dimension_numbers<[1], [0], [0], [1], [0, 0, 1, 1], [], []>} : vector<32x256xbf16>, vector<256x768xbf16>, vector<32x768xf32> -> vector<32x768xf32>
    %c0_6 = arith.constant 0 : index
    %c0_7 = arith.constant 0 : index
    %c0_8 = arith.constant 0 : index
    %9 = vector.load %arg4[%c0_6, %c0_7, %c0_8] : memref<1x1x768xf32, #tpu.memory_space<vmem>>, vector<1x1x768xf32>
    %10 = vector.shape_cast %9 : vector<1x1x768xf32> to vector<1x768xf32>
    %11 = vector.broadcast %10 : vector<1x768xf32> to vector<32x768xf32>
    %12 = arith.addf %8, %11 : vector<32x768xf32>
    %13 = vector.extract_strided_slice %12 {offsets = [0, 0], sizes = [32, 256], strides = [1, 1]} : vector<32x768xf32> to vector<32x256xf32>
    %cst_9 = arith.constant 0.0883883461 : f32
    %14 = vector.broadcast %cst_9 : f32 to vector<32x256xf32>
    %15 = arith.mulf %13, %14 : vector<32x256xf32>
    %16 = arith.truncf %15 : vector<32x256xf32> to vector<32x256xbf16>
    %17 = vector.shape_cast %16 : vector<32x256xbf16> to vector<2x16x256xbf16>
    %18 = vector.extract_strided_slice %12 {offsets = [0, 256], sizes = [32, 256], strides = [1, 1]} : vector<32x768xf32> to vector<32x256xf32>
    %19 = arith.truncf %18 : vector<32x256xf32> to vector<32x256xbf16>
    %20 = vector.shape_cast %19 : vector<32x256xbf16> to vector<2x16x256xbf16>
    %21 = vector.extract_strided_slice %12 {offsets = [0, 512], sizes = [32, 256], strides = [1, 1]} : vector<32x768xf32> to vector<32x256xf32>
    %22 = arith.truncf %21 : vector<32x256xf32> to vector<32x256xbf16>
    %23 = vector.shape_cast %22 : vector<32x256xbf16> to vector<2x16x256xbf16>
    %24 = vector.extract_strided_slice %17 {offsets = [0, 0, 0], sizes = [2, 16, 128], strides = [1, 1, 1]} : vector<2x16x256xbf16> to vector<2x16x128xbf16>
    %25 = vector.extract_strided_slice %20 {offsets = [0, 0, 0], sizes = [2, 16, 128], strides = [1, 1, 1]} : vector<2x16x256xbf16> to vector<2x16x128xbf16>
    %26 = vector.extract_strided_slice %23 {offsets = [0, 0, 0], sizes = [2, 16, 128], strides = [1, 1, 1]} : vector<2x16x256xbf16> to vector<2x16x128xbf16>
    "tpu.trace_start"() <{level = 10 : i32, message = "bqd,bkd->bqk"}> : () -> ()
    %cst_10 = arith.constant dense<0.000000e+00> : vector<2x16x16xf32>
    %27 = tpu.matmul %24, %25, %cst_10 {dimension_numbers = #tpu.dot_dimension_numbers<[2], [2], [1], [1], [0, 0, 0, 1, 1, 1], [0], [0]>} : vector<2x16x128xbf16>, vector<2x16x128xbf16>, vector<2x16x16xf32> -> vector<2x16x16xf32>
    "tpu.trace_stop"() : () -> ()
    %cst_11 = arith.constant dense<0xFF800000> : vector<2x16xf32>
    %28 = vector.multi_reduction <maximumf>, %27, %cst_11 [2] : vector<2x16x16xf32> to vector<2x16xf32>
    %29 = vector.shape_cast %28 : vector<2x16xf32> to vector<2x16x1xf32>
    %30 = vector.broadcast %29 : vector<2x16x1xf32> to vector<2x16x16xf32>
    %31 = arith.subf %27, %30 : vector<2x16x16xf32>
    %32 = math.exp %31 : vector<2x16x16xf32>
    %cst_12 = arith.constant dense<0.000000e+00> : vector<2x16xf32>
    %33 = vector.multi_reduction <add>, %32, %cst_12 [2] : vector<2x16x16xf32> to vector<2x16xf32>
    %34 = vector.shape_cast %33 : vector<2x16xf32> to vector<2x16x1xf32>
    %35 = tpu.reciprocal %34 {approx = true} : vector<2x16x1xf32> -> vector<2x16x1xf32>
    %36 = vector.broadcast %35 : vector<2x16x1xf32> to vector<2x16x16xf32>
    %37 = arith.mulf %32, %36 : vector<2x16x16xf32>
    %38 = arith.truncf %37 : vector<2x16x16xf32> to vector<2x16x16xbf16>
    "tpu.trace_start"() <{level = 10 : i32, message = "bqk,bkd->bqd"}> : () -> ()
    %cst_13 = arith.constant dense<0.000000e+00> : vector<2x16x128xf32>
    %39 = tpu.matmul %38, %26, %cst_13 {dimension_numbers = #tpu.dot_dimension_numbers<[2], [1], [1], [2], [0, 0, 0, 1, 1, 2], [0], [0]>} : vector<2x16x16xbf16>, vector<2x16x128xbf16>, vector<2x16x128xf32> -> vector<2x16x128xf32>
    "tpu.trace_stop"() : () -> ()
    %40 = vector.extract_strided_slice %17 {offsets = [0, 0, 128], sizes = [2, 16, 128], strides = [1, 1, 1]} : vector<2x16x256xbf16> to vector<2x16x128xbf16>
    %41 = vector.extract_strided_slice %20 {offsets = [0, 0, 128], sizes = [2, 16, 128], strides = [1, 1, 1]} : vector<2x16x256xbf16> to vector<2x16x128xbf16>
    %42 = vector.extract_strided_slice %23 {offsets = [0, 0, 128], sizes = [2, 16, 128], strides = [1, 1, 1]} : vector<2x16x256xbf16> to vector<2x16x128xbf16>
    "tpu.trace_start"() <{level = 10 : i32, message = "bqd,bkd->bqk"}> : () -> ()
    %cst_14 = arith.constant dense<0.000000e+00> : vector<2x16x16xf32>
    %43 = tpu.matmul %40, %41, %cst_14 {dimension_numbers = #tpu.dot_dimension_numbers<[2], [2], [1], [1], [0, 0, 0, 1, 1, 1], [0], [0]>} : vector<2x16x128xbf16>, vector<2x16x128xbf16>, vector<2x16x16xf32> -> vector<2x16x16xf32>
    "tpu.trace_stop"() : () -> ()
    %cst_15 = arith.constant dense<0xFF800000> : vector<2x16xf32>
    %44 = vector.multi_reduction <maximumf>, %43, %cst_15 [2] : vector<2x16x16xf32> to vector<2x16xf32>
    %45 = vector.shape_cast %44 : vector<2x16xf32> to vector<2x16x1xf32>
    %46 = vector.broadcast %45 : vector<2x16x1xf32> to vector<2x16x16xf32>
    %47 = arith.subf %43, %46 : vector<2x16x16xf32>
    %48 = math.exp %47 : vector<2x16x16xf32>
    %cst_16 = arith.constant dense<0.000000e+00> : vector<2x16xf32>
    %49 = vector.multi_reduction <add>, %48, %cst_16 [2] : vector<2x16x16xf32> to vector<2x16xf32>
    %50 = vector.shape_cast %49 : vector<2x16xf32> to vector<2x16x1xf32>
    %51 = tpu.reciprocal %50 {approx = true} : vector<2x16x1xf32> -> vector<2x16x1xf32>
    %52 = vector.broadcast %51 : vector<2x16x1xf32> to vector<2x16x16xf32>
    %53 = arith.mulf %48, %52 : vector<2x16x16xf32>
    %54 = arith.truncf %53 : vector<2x16x16xf32> to vector<2x16x16xbf16>
    "tpu.trace_start"() <{level = 10 : i32, message = "bqk,bkd->bqd"}> : () -> ()
    %cst_17 = arith.constant dense<0.000000e+00> : vector<2x16x128xf32>
    %55 = tpu.matmul %54, %42, %cst_17 {dimension_numbers = #tpu.dot_dimension_numbers<[2], [1], [1], [2], [0, 0, 0, 1, 1, 2], [0], [0]>} : vector<2x16x16xbf16>, vector<2x16x128xbf16>, vector<2x16x128xf32> -> vector<2x16x128xf32>
    "tpu.trace_stop"() : () -> ()
    %56 = tpu.concatenate %39, %55 in 2 : vector<2x16x128xf32>, vector<2x16x128xf32> -> vector<2x16x256xf32>
    %57 = vector.shape_cast %56 : vector<2x16x256xf32> to vector<32x256xf32>
    %58 = arith.truncf %57 : vector<32x256xf32> to vector<32x256xbf16>
    %c0_18 = arith.constant 0 : index
    %c0_19 = arith.constant 0 : index
    %c0_20 = arith.constant 0 : index
    %59 = vector.load %arg5[%c0_18, %c0_19, %c0_20] : memref<1x256x256xbf16, #tpu.memory_space<vmem>>, vector<1x256x256xbf16>
    %60 = vector.shape_cast %59 : vector<1x256x256xbf16> to vector<256x256xbf16>
    %cst_21 = arith.constant dense<0.000000e+00> : vector<32x256xf32>
    %61 = tpu.matmul %58, %60, %cst_21 {dimension_numbers = #tpu.dot_dimension_numbers<[1], [0], [0], [1], [0, 0, 1, 1], [], []>} : vector<32x256xbf16>, vector<256x256xbf16>, vector<32x256xf32> -> vector<32x256xf32>
    %c0_22 = arith.constant 0 : index
    %c0_23 = arith.constant 0 : index
    %c0_24 = arith.constant 0 : index
    %62 = vector.load %arg6[%c0_22, %c0_23, %c0_24] : memref<1x1x256xf32, #tpu.memory_space<vmem>>, vector<1x1x256xf32>
    %63 = vector.shape_cast %62 : vector<1x1x256xf32> to vector<1x256xf32>
    %64 = vector.broadcast %63 : vector<1x256xf32> to vector<32x256xf32>
    %65 = arith.addf %61, %64 : vector<32x256xf32>
    %66 = arith.addf %4, %65 : vector<32x256xf32>
    %c0_25 = arith.constant 0 : index
    %c0_26 = arith.constant 0 : index
    %c0_27 = arith.constant 0 : index
    %67 = vector.load %arg7[%c0_25, %c0_26, %c0_27] : memref<1x1x256xf32, #tpu.memory_space<vmem>>, vector<1x1x256xf32>
    %68 = vector.shape_cast %67 : vector<1x1x256xf32> to vector<1x256xf32>
    %c0_28 = arith.constant 0 : index
    %c0_29 = arith.constant 0 : index
    %c0_30 = arith.constant 0 : index
    %69 = vector.load %arg8[%c0_28, %c0_29, %c0_30] : memref<1x1x256xf32, #tpu.memory_space<vmem>>, vector<1x1x256xf32>
    %70 = vector.shape_cast %69 : vector<1x1x256xf32> to vector<1x256xf32>
    %cst_31 = arith.constant dense<0.000000e+00> : vector<32xf32>
    %71 = vector.multi_reduction <add>, %66, %cst_31 [1] : vector<32x256xf32> to vector<32xf32>
    %72 = vector.shape_cast %71 : vector<32xf32> to vector<32x1xf32>
    %cst_32 = arith.constant 2.560000e+02 : f32
    %73 = vector.broadcast %cst_32 : f32 to vector<32x1xf32>
    %74 = arith.divf %72, %73 : vector<32x1xf32>
    %75 = vector.broadcast %74 : vector<32x1xf32> to vector<32x256xf32>
    %76 = arith.subf %66, %75 : vector<32x256xf32>
    %77 = arith.mulf %76, %76 : vector<32x256xf32>
    %cst_33 = arith.constant dense<0.000000e+00> : vector<32xf32>
    %78 = vector.multi_reduction <add>, %77, %cst_33 [1] : vector<32x256xf32> to vector<32xf32>
    %79 = vector.shape_cast %78 : vector<32xf32> to vector<32x1xf32>
    %cst_34 = arith.constant 2.560000e+02 : f32
    %80 = vector.broadcast %cst_34 : f32 to vector<32x1xf32>
    %81 = arith.divf %79, %80 : vector<32x1xf32>
    %cst_35 = arith.constant 9.99999974E-6 : f32
    %82 = vector.broadcast %cst_35 : f32 to vector<32x1xf32>
    %83 = arith.addf %81, %82 : vector<32x1xf32>
    %84 = math.rsqrt %83 : vector<32x1xf32>
    %85 = vector.broadcast %84 : vector<32x1xf32> to vector<32x256xf32>
    %86 = arith.mulf %76, %85 : vector<32x256xf32>
    %87 = vector.broadcast %68 : vector<1x256xf32> to vector<32x256xf32>
    %88 = arith.mulf %86, %87 : vector<32x256xf32>
    %89 = vector.broadcast %70 : vector<1x256xf32> to vector<32x256xf32>
    %90 = arith.addf %88, %89 : vector<32x256xf32>
    %91 = arith.truncf %90 : vector<32x256xf32> to vector<32x256xbf16>
    %c0_36 = arith.constant 0 : index
    %c0_37 = arith.constant 0 : index
    %c0_38 = arith.constant 0 : index
    %92 = vector.load %arg9[%c0_36, %c0_37, %c0_38] : memref<1x256x512xbf16, #tpu.memory_space<vmem>>, vector<1x256x512xbf16>
    %93 = vector.shape_cast %92 : vector<1x256x512xbf16> to vector<256x512xbf16>
    %cst_39 = arith.constant dense<0.000000e+00> : vector<32x512xf32>
    %94 = tpu.matmul %91, %93, %cst_39 {dimension_numbers = #tpu.dot_dimension_numbers<[1], [0], [0], [1], [0, 0, 1, 1], [], []>} : vector<32x256xbf16>, vector<256x512xbf16>, vector<32x512xf32> -> vector<32x512xf32>
    %c0_40 = arith.constant 0 : index
    %c0_41 = arith.constant 0 : index
    %c0_42 = arith.constant 0 : index
    %95 = vector.load %arg10[%c0_40, %c0_41, %c0_42] : memref<1x1x512xf32, #tpu.memory_space<vmem>>, vector<1x1x512xf32>
    %96 = vector.shape_cast %95 : vector<1x1x512xf32> to vector<1x512xf32>
    %97 = vector.broadcast %96 : vector<1x512xf32> to vector<32x512xf32>
    %98 = arith.addf %94, %97 : vector<32x512xf32>
    %cst_43 = arith.constant 0.000000e+00 : f32
    %99 = vector.broadcast %cst_43 : f32 to vector<32x512xf32>
    %100 = arith.maximumf %98, %99 : vector<32x512xf32>
    %101 = arith.truncf %100 : vector<32x512xf32> to vector<32x512xbf16>
    %c0_44 = arith.constant 0 : index
    %c0_45 = arith.constant 0 : index
    %c0_46 = arith.constant 0 : index
    %102 = vector.load %arg11[%c0_44, %c0_45, %c0_46] : memref<1x512x256xbf16, #tpu.memory_space<vmem>>, vector<1x512x256xbf16>
    %103 = vector.shape_cast %102 : vector<1x512x256xbf16> to vector<512x256xbf16>
    %cst_47 = arith.constant dense<0.000000e+00> : vector<32x256xf32>
    %104 = tpu.matmul %101, %103, %cst_47 {dimension_numbers = #tpu.dot_dimension_numbers<[1], [0], [0], [1], [0, 0, 1, 1], [], []>} : vector<32x512xbf16>, vector<512x256xbf16>, vector<32x256xf32> -> vector<32x256xf32>
    %c0_48 = arith.constant 0 : index
    %c0_49 = arith.constant 0 : index
    %c0_50 = arith.constant 0 : index
    %105 = vector.load %arg12[%c0_48, %c0_49, %c0_50] : memref<1x1x256xf32, #tpu.memory_space<vmem>>, vector<1x1x256xf32>
    %106 = vector.shape_cast %105 : vector<1x1x256xf32> to vector<1x256xf32>
    %107 = vector.broadcast %106 : vector<1x256xf32> to vector<32x256xf32>
    %108 = arith.addf %104, %107 : vector<32x256xf32>
    %109 = arith.addf %108, %90 : vector<32x256xf32>
    %c0_51 = arith.constant 0 : index
    %c0_52 = arith.constant 0 : index
    %c0_53 = arith.constant 0 : index
    %110 = vector.load %arg13[%c0_51, %c0_52, %c0_53] : memref<1x1x256xf32, #tpu.memory_space<vmem>>, vector<1x1x256xf32>
    %111 = vector.shape_cast %110 : vector<1x1x256xf32> to vector<1x256xf32>
    %c0_54 = arith.constant 0 : index
    %c0_55 = arith.constant 0 : index
    %c0_56 = arith.constant 0 : index
    %112 = vector.load %arg14[%c0_54, %c0_55, %c0_56] : memref<1x1x256xf32, #tpu.memory_space<vmem>>, vector<1x1x256xf32>
    %113 = vector.shape_cast %112 : vector<1x1x256xf32> to vector<1x256xf32>
    %cst_57 = arith.constant dense<0.000000e+00> : vector<32xf32>
    %114 = vector.multi_reduction <add>, %109, %cst_57 [1] : vector<32x256xf32> to vector<32xf32>
    %115 = vector.shape_cast %114 : vector<32xf32> to vector<32x1xf32>
    %cst_58 = arith.constant 2.560000e+02 : f32
    %116 = vector.broadcast %cst_58 : f32 to vector<32x1xf32>
    %117 = arith.divf %115, %116 : vector<32x1xf32>
    %118 = vector.broadcast %117 : vector<32x1xf32> to vector<32x256xf32>
    %119 = arith.subf %109, %118 : vector<32x256xf32>
    %120 = arith.mulf %119, %119 : vector<32x256xf32>
    %cst_59 = arith.constant dense<0.000000e+00> : vector<32xf32>
    %121 = vector.multi_reduction <add>, %120, %cst_59 [1] : vector<32x256xf32> to vector<32xf32>
    %122 = vector.shape_cast %121 : vector<32xf32> to vector<32x1xf32>
    %cst_60 = arith.constant 2.560000e+02 : f32
    %123 = vector.broadcast %cst_60 : f32 to vector<32x1xf32>
    %124 = arith.divf %122, %123 : vector<32x1xf32>
    %cst_61 = arith.constant 9.99999974E-6 : f32
    %125 = vector.broadcast %cst_61 : f32 to vector<32x1xf32>
    %126 = arith.addf %124, %125 : vector<32x1xf32>
    %127 = math.rsqrt %126 : vector<32x1xf32>
    %128 = vector.broadcast %127 : vector<32x1xf32> to vector<32x256xf32>
    %129 = arith.mulf %119, %128 : vector<32x256xf32>
    %130 = vector.broadcast %111 : vector<1x256xf32> to vector<32x256xf32>
    %131 = arith.mulf %129, %130 : vector<32x256xf32>
    %132 = vector.broadcast %113 : vector<1x256xf32> to vector<32x256xf32>
    %133 = arith.addf %131, %132 : vector<32x256xf32>
    %134 = vector.shape_cast %133 : vector<32x256xf32> to vector<2x16x256xf32>
    %c0_62 = arith.constant 0 : index
    %c0_63 = arith.constant 0 : index
    %c0_64 = arith.constant 0 : index
    %135 = vector.load %arg16[%c0_62, %c0_63, %c0_64] : memref<2x16x256xf32, #tpu.memory_space<vmem>>, vector<2x16x256xf32>
    tpu.vector_store %arg16[%c0_62, %c0_63, %c0_64], %134 {strides = array<i32>} : memref<2x16x256xf32, #tpu.memory_space<vmem>>, vector<2x16x256xf32>,
    %c1_i32 = arith.constant 1 : i32
    %136 = arith.cmpi eq, %arg1, %c1_i32 : i32
    %137 = arith.extui %136 : i1 to i32
    %c0_i32_65 = arith.constant 0 : i32
    %138 = arith.cmpi ne, %137, %c0_i32_65 : i32
    scf.if %138 {
      %139 = vector.shape_cast %133 : vector<32x256xf32> to vector<2x16x256xf32>
      %c0_66 = arith.constant 0 : index
      %c0_67 = arith.constant 0 : index
      %c0_68 = arith.constant 0 : index
      %140 = vector.load %arg15[%c0_66, %c0_67, %c0_68] : memref<2x16x256xf32, #tpu.memory_space<vmem>>, vector<2x16x256xf32>
      tpu.vector_store %arg15[%c0_66, %c0_67, %c0_68], %139 {strides = array<i32>} : memref<2x16x256xf32, #tpu.memory_space<vmem>>, vector<2x16x256xf32>,
    } else {
    }
    return
  }
  func.func @transform_1(%arg0: i32, %arg1: i32) -> (i32, i32, i32) {
    %c0_i32 = arith.constant 0 : i32
    %c0_i32_0 = arith.constant 0 : i32
    %c0_i32_1 = arith.constant 0 : i32
    return %arg1, %c0_i32, %c0_i32_0 : i32, i32, i32
  }
  func.func @transform_2(%arg0: i32, %arg1: i32) -> (i32, i32, i32) {
    %c0_i32 = arith.constant 0 : i32
    %c0_i32_0 = arith.constant 0 : i32
    %c0_i32_1 = arith.constant 0 : i32
    return %arg1, %c0_i32, %c0_i32_0 : i32, i32, i32
  }
  func.func @transform_3(%arg0: i32, %arg1: i32) -> (i32, i32, i32) {
    %c0_i32 = arith.constant 0 : i32
    %c0_i32_0 = arith.constant 0 : i32
    %c0_i32_1 = arith.constant 0 : i32
    return %arg1, %c0_i32, %c0_i32_0 : i32, i32, i32
  }
  func.func @transform_4(%arg0: i32, %arg1: i32) -> (i32, i32, i32) {
    %c0_i32 = arith.constant 0 : i32
    %c0_i32_0 = arith.constant 0 : i32
    %c0_i32_1 = arith.constant 0 : i32
    return %arg1, %c0_i32, %c0_i32_0 : i32, i32, i32
  }
  func.func @transform_5(%arg0: i32, %arg1: i32) -> (i32, i32, i32) {
    %c0_i32 = arith.constant 0 : i32
    %c0_i32_0 = arith.constant 0 : i32
    %c0_i32_1 = arith.constant 0 : i32
    return %arg1, %c0_i32, %c0_i32_0 : i32, i32, i32
  }
  func.func @transform_6(%arg0: i32, %arg1: i32) -> (i32, i32, i32) {
    %c0_i32 = arith.constant 0 : i32
    %c0_i32_0 = arith.constant 0 : i32
    %c0_i32_1 = arith.constant 0 : i32
    return %arg1, %c0_i32, %c0_i32_0 : i32, i32, i32
  }
  func.func @transform_7(%arg0: i32, %arg1: i32) -> (i32, i32, i32) {
    %c0_i32 = arith.constant 0 : i32
    %c0_i32_0 = arith.constant 0 : i32
    %c0_i32_1 = arith.constant 0 : i32
    return %arg1, %c0_i32, %c0_i32_0 : i32, i32, i32
  }
  func.func @transform_8(%arg0: i32, %arg1: i32) -> (i32, i32, i32) {
    %c0_i32 = arith.constant 0 : i32
    %c0_i32_0 = arith.constant 0 : i32
    %c0_i32_1 = arith.constant 0 : i32
    return %arg1, %c0_i32, %c0_i32_0 : i32, i32, i32
  }
  func.func @transform_9(%arg0: i32, %arg1: i32) -> (i32, i32, i32) {
    %c0_i32 = arith.constant 0 : i32
    %c0_i32_0 = arith.constant 0 : i32
    %c0_i32_1 = arith.constant 0 : i32
    return %arg1, %c0_i32, %c0_i32_0 : i32, i32, i32
  }
  func.func @transform_10(%arg0: i32, %arg1: i32) -> (i32, i32, i32) {
    %c0_i32 = arith.constant 0 : i32
    %c0_i32_0 = arith.constant 0 : i32
    %c0_i32_1 = arith.constant 0 : i32
    return %arg1, %c0_i32, %c0_i32_0 : i32, i32, i32
  }
  func.func @transform_11(%arg0: i32, %arg1: i32) -> (i32, i32, i32) {
    %c0_i32 = arith.constant 0 : i32
    %c0_i32_0 = arith.constant 0 : i32
    %c0_i32_1 = arith.constant 0 : i32
    return %arg1, %c0_i32, %c0_i32_0 : i32, i32, i32
  }
  func.func @transform_12(%arg0: i32, %arg1: i32) -> (i32, i32, i32) {
    %c0_i32 = arith.constant 0 : i32
    %c0_i32_0 = arith.constant 0 : i32
    %c0_i32_1 = arith.constant 0 : i32
    return %arg1, %c0_i32, %c0_i32_0 : i32, i32, i32
  }
  func.func @transform_13(%arg0: i32, %arg1: i32) -> (i32, i32, i32) {
    %c0_i32 = arith.constant 0 : i32
    %c0_i32_0 = arith.constant 0 : i32
    %c0_i32_1 = arith.constant 0 : i32
    return %arg0, %c0_i32, %c0_i32_0 : i32, i32, i32
  }
}

</mosaic_0001>

<bundles_post_ra>
// kernel: tpu_custom_call.1
= control target key start
LH: loop header
LB: loop body
LE: loop exit
PB: predicated region body
PF: predicated region fallthrough
CT: control target
= control target key end

     0   :  { %s6011_s0 = inlined_call_operand.hbm [shape: f32[2,16,256], index: 0, kind: input, shape index: {}]   ;;  %s6012_s1 = inlined_call_operand.hbm [shape: bf16[2,256,768], index: 1, kind: input, shape index: {}]   ;;  %s6013_s2 = inlined_call_operand.hbm [shape: f32[2,1,768], index: 2, kind: input, shape index: {}]   ;;  %s6014_s3 = inlined_call_operand.hbm [shape: bf16[2,256,256], index: 3, kind: input, shape index: {}]   ;;  %s6015_s4 = inlined_call_operand.vmem [shape: f32[2,1,256], index: 4, kind: input, shape index: {}]   ;;  %s6016_s5 = inlined_call_operand.vmem [shape: f32[2,1,256], index: 5, kind: input, shape index: {}]   ;;  %s6017_s6 = inlined_call_operand.vmem [shape: f32[2,1,256], index: 6, kind: input, shape index: {}]   ;;  %s6018_s7 = inlined_call_operand.hbm [shape: bf16[2,256,512], index: 7, kind: input, shape index: {}]   ;;  %s6019_s8 = inlined_call_operand.vmem [shape: f32[2,1,512], index: 8, kind: input, shape index: {}]   ;;  %s6020_s9 = inlined_call_operand.hbm [shape: bf16[2,512,256], index: 9, kind: input, shape index: {}]   ;;  %s6021_s10 = inlined_call_operand.vmem [shape: f32[2,1,256], index: 10, kind: input, shape index: {}]   ;;  %s6022_s11 = inlined_call_operand.vmem [shape: f32[2,1,256], index: 11, kind: input, shape index: {}]   ;;  %s6023_s12 = inlined_call_operand.vmem [shape: f32[2,1,256], index: 12, kind: input, shape index: {}]   ;;  %s6024_s13 = inlined_call_operand.hbm [shape: f32[2,16,256], index: 13, kind: output, shape index: {}]  }
   0x1   :  { %6044 = sst [smem:[#allocation30_spill]] %s6011_s0 }
   0x2   :  { %6045 = sst [smem:[#allocation31_spill]] %s6012_s1 }
   0x3   :  { %6046 = sst [smem:[#allocation32_spill]] %s6013_s2 }
   0x4   :  { %6047 = sst [smem:[#allocation33_spill]] %s6014_s3 }
   0x5   :  { %6048 = sst [smem:[#allocation34_spill]] %s6015_s4 }
   0x6   :  { %6049 = sst [smem:[#allocation35_spill]] %s6016_s5 }
   0x7   :  { %6050 = sst [smem:[#allocation36_spill]] %s6017_s6 }
   0x8   :  { %6051 = sst [smem:[#allocation37_spill]] %s6018_s7 }
   0x9   :  { %6052 = sst [smem:[#allocation38_spill]] %s6019_s8 }
   0xa   :  { %6053 = sst [smem:[#allocation39_spill]] %s6020_s9 }
   0xb   :  { %6054 = sst [smem:[#allocation40_spill]] %s6021_s10 }
   0xc   :  { %6055 = sst [smem:[#allocation41_spill]] %s6022_s11 }
   0xd   :  { %6056 = sst [smem:[#allocation42_spill]] %s6023_s12 }
   0xe   :  { %6057 = sst [smem:[#allocation43_spill]] %s6024_s13 }
   0xf   :  { %18 = vsyncpa [#allocation5], 0 }
  0x10   :  { %20 = vsyncpa [#allocation5 + $0x1], 0 }
  0x11   :  { %21 = vsyncpa [#allocation8], 0 }
  0x12   :  { %23 = vsyncpa [#allocation8 + $0x1], 0 }
  0x13   :  { %24 = vsyncpa [#allocation11], 0 }
  0x14   :  { %26 = vsyncpa [#allocation11 + $0x1], 0 }
  0x15   :  { %27 = vsyncpa [#allocation6], 0  ;;  %s5042_s25 = smov 0   ;;  %s5044_s26 = smov 0  }
  0x16   :  { %s5046_s27 = smov 0   ;;  %s5048_s28 = smov 0  }
  0x17   :  { %s5050_s29 = smov 0   ;;  %s5052_s30 = smov 0  }
  0x18 LB: > { %6058 = sst [smem:[#allocation23_spill]] %s4937_s26  ;;  %s5071_s14 = sadd.s32 4294967295, %s4953_s30   ;;  %s4953_s30 = sphi %s5052_s30, %s33_s30   ;;  %s4949_s29 = sphi %s5050_s29, %s6097_s29   ;;  %s4945_s28 = sphi %s5048_s28, %s6096_s28   ;;  %s4941_s27 = sphi %s5046_s27, %s6095_s27   ;;  %s4937_s26 = sphi %s5044_s26, %s6094_s26   ;;  %s4933_s25 = sphi %s5042_s25, %s6093_s25  }
  0x19   : > { %6059 = sst [smem:[#allocation24_spill]] %s4941_s27  ;;  %s42_s15 = sadd.s32 1, %s4949_s29 }
  0x1a   : > { %6060 = sst [smem:[#allocation25_spill]] %s4949_s29  ;;  %p43_p0 = scmp.ge.s32.totalorder %s42_s15, 2 }
  0x1b   : > { %6061 = sst [smem:[#allocation26_spill]] %s4953_s30  ;;  %s52_s16 = sadd.s32 1, %s4941_s27 }
  0x1c   : > { %6062 = sst [smem:[#allocation27_spill]] %s5071_s14  ;;  %p59_p1 = scmp.ne.s32.totalorder %s4941_s27, %s4937_s26 }
  0x1d   : > { %p60_p2 = scmp.eq.s32.totalorder %s4953_s30, 0  ;;  %s6099_s15 = smov (%p43_p0, %s42_s15), 0 }
  0x1e   : > { %6063 = sst [smem:[#allocation28_spill]] %s6099_s15  ;;  %p65_p4 = scmp.ne.s32.totalorder %s4937_s26, %s4933_s25 }
  0x1f   : > { %p61_p3 = por %p60_p2, %p59_p1  ;;  %s49_s17 = ssub.s32 %s4949_s29, %s6099_s15 }
  0x20   : > { %p66_p5 = scmp.eq.s32.totalorder %s5071_s14, 0  ;;  %p50_p6 = scmp.eq.s32.totalorder %s49_s17, 0 }
  0x21   : > { %p4181_p8 = scmp.lt.s32.totalorder %s4953_s30, 2  ;;  %s5093_s20 = sand.u32 1, %s4941_s27  }
  0x22   : > { %p5084_p7 = por %p66_p5, %p65_p4  ;;  %s6029_s22 = sand.u32 1, %s4953_s30  }
  0x23   : > { %s5090_s19 = scalar_select %p50_p6, %s4941_s27, %s52_s16  }
  0x24   : > { %s6064_s18 = scalar_select %p5084_p7, 1, 0 }
  0x25   : > { %6065 = sst [smem:[#allocation29_spill]] %s5090_s19  ;;  %p5095_p9 = pnand %p4181_p8, %p61_p3 }
  0x26   : > { %s4144_s23 = smul.u32 6, %s5093_s20  ;;  %s6067_s2 = sld [smem:[#allocation32_spill]] }
  0x27   : > { %s4145_s24 = smul.u32 96, %s4949_s29  ;;  %s5111_s16 = scalar_lea.sflag [#allocation8], %s6029_s22 }
  0x28   : > { %s426_s25 = scalar_lea.vmem [#allocation7], %s4144_s23  ;;  %p5117_p11 = pneg %p5095_p9 }
  0x29   : > { %s434_s17 = sshll.u32 %s426_s25, 4  ;;  %s5107_s17 = int_to_ptr.vmem [resolvable:$true] %s434_s17 }
  0x2c   : > { %s5105_s0 = scalar_lea.hbm %s6067_s2, %s4145_s24  ;;  %s4690_s24 = scalar_lea.hbm %s6067_s2, 192 }
  0x2d   : > { %s4685_s19 = scalar_lea.hbm %s5105_s0, 96  ;;  %p4691_p0 = scmp.lt.u32.totalorder %s5105_s0, %s6067_s2 }
  0x2e   : > { %p4686_p10 = scmp.ne.s32.totalorder %s5105_s0, %s4685_s19  ;;  %p4692_p1 = scmp.lt.u32.totalorder %s4690_s24, %s4685_s19 }
  0x2f   : > { %p4694_p3 = scmp.lt.u32.totalorder %s4685_s19, %s5105_s0 }
  0x30   : > { %p4688_p12 = pnand %p5117_p11, %p4686_p10  ;;  %p4693_p2 = por %p4692_p1, %p4691_p0 }
  0x32   : > { %p4689_p13 = pneg %p4688_p12  ;;  %p4695_p4 = por %p4694_p3, %p4693_p2 }
  0x34   : > { %p4696_p5 = pnand %p4695_p4, %p4689_p13 }
  0x36   : > { %4699 = shalt.err (!%p4696_p5)
}
  0x37   : > { %s4700_s22 = scalar_lea.vmem %s5107_s17, 96  ;;  %s4955_s13 = smov [#allocation7]  }
  0x38   : > { %p4701_p6 = scmp.ne.s32.totalorder %s5107_s17, %s4700_s22  ;;  %s4705_s15 = sshll.u32 %s4955_s13, 4  ;;  %s4706_s15 = int_to_ptr.vmem [resolvable:$false] %s4705_s15 }
  0x39   : > { %s4707_s27 = scalar_lea.vmem %s4706_s15, 192  ;;  %p4708_p12 = scmp.lt.s32.totalorder %s5107_s17, %s4706_s15 }
  0x3a   : > { %p4703_p8 = pnand %p4701_p6, %p5117_p11  ;;  %p4709_p7 = scmp.lt.s32.totalorder %s4707_s27, %s4700_s22 }
  0x3c   : > { %p4704_p10 = pneg %p4703_p8  ;;  %p4710_p0 = por %p4709_p7, %p4708_p12 }
  0x3e   : > { %p4711_p1 = pnand %p4710_p0, %p4704_p10 }
  0x40   : > { %4714 = shalt.err (!%p4711_p1)
}
  0x41   : > { %4171 = dma.hbm_to_vmem [thread:$0]  (!%p5095_p9), %s5105_s0, 96, %s5107_s17, %s5111_s16  }
  0x42   : > { %p3781_p13 = scmp.ge.s32.totalorder %s4953_s30, 1  ;;  %p551_p2 = scmp.lt.s32.totalorder %s4953_s30, 3 }
  0x43   : > { %s3775_s19 = sshll.u32 %s5093_s20, 9  ;;  %s6032_s22 = sshll.u32 %s4949_s29, 13 }
  0x44   : > { %p5145_p7 = pnand %p3781_p13, %p551_p2  ;;  %s6070_s7 = sld [smem:[#allocation37_spill]] }
  0x45   : > { %s487_s0 = scalar_lea.vmem [#allocation10], %s3775_s19  ;;  %s6071_s27 = sand.u32 1, %s4953_s30  }
  0x46   : > { %s6069_s24 = scalar_select %p5145_p7, 1, 0 }
  0x47   : > { %s494_s17 = sshll.u32 %s487_s0, 4  ;;  %s5162_s2 = scalar_lea.sflag [#allocation11], %s6071_s27  ;;  %s5158_s17 = int_to_ptr.vmem [resolvable:$true] %s494_s17 }
  0x4a   : > { %s5154_s15 = scalar_lea.hbm %s6070_s7, %s6032_s22  ;;  %s4720_s22 = scalar_lea.hbm %s6070_s7, 16384 }
  0x4b   : > { %s4715_s12 = scalar_lea.hbm %s5154_s15, 8192  ;;  %p4721_p6 = scmp.lt.u32.totalorder %s5154_s15, %s6070_s7 }
  0x4c   : > { %p4716_p3 = scmp.ne.s32.totalorder %s5154_s15, %s4715_s12  ;;  %p4722_p8 = scmp.lt.u32.totalorder %s4720_s22, %s4715_s12 }
  0x4d   : > { %p4724_p12 = scmp.lt.u32.totalorder %s4715_s12, %s5154_s15 }
  0x4e   : > { %p4718_p4 = pnand %p4716_p3, %p5117_p11  ;;  %p4723_p10 = por %p4722_p8, %p4721_p6 }
  0x50   : > { %p4719_p5 = pneg %p4718_p4  ;;  %p4725_p0 = por %p4724_p12, %p4723_p10 }
  0x52   : > { %p4726_p1 = pnand %p4725_p0, %p4719_p5 }
  0x54   : > { %4729 = shalt.err (!%p4726_p1)
}
  0x55   : > { %s4730_s0 = scalar_lea.vmem %s5158_s17, 8192  ;;  %s4956_s27 = smov [#allocation10]  }
  0x56   : > { %p4731_p13 = scmp.ne.s32.totalorder %s5158_s17, %s4730_s0  ;;  %s4735_s25 = sshll.u32 %s4956_s27, 4  ;;  %s4736_s25 = int_to_ptr.vmem [resolvable:$false] %s4735_s25 }
  0x57   : > { %s4737_s10 = scalar_lea.vmem %s4736_s25, 16384  ;;  %p4738_p4 = scmp.lt.s32.totalorder %s5158_s17, %s4736_s25 }
  0x58   : > { %p4733_p2 = pnand %p4731_p13, %p5117_p11  ;;  %p4739_p7 = scmp.lt.s32.totalorder %s4737_s10, %s4730_s0 }
  0x5a   : > { %p4734_p3 = pneg %p4733_p2  ;;  %p4740_p6 = por %p4739_p7, %p4738_p4 }
  0x5c   : > { %p4741_p8 = pnand %p4740_p6, %p4734_p3 }
  0x5e   : > { %4744 = shalt.err (!%p4741_p8)
}
  0x5f   : > { %s4957_s11 = smov 256   ;;  %s4958_s12 = smov 16  }
  0x60   : > { %4177 = dma.hbm_to_vmem [thread:$0]  (!%p5095_p9), %s5154_s15, 8192, %s5158_s17, %s5162_s2, %s4957_s11, %s4957_s11, %s4958_s12  }
  0x61   : > { %s6072_s22 = sshll.u32 %s4949_s29, 13  ;;  %s6073_s9 = sld [smem:[#allocation39_spill]] }
  0x62   : > { %s515_s25 = scalar_lea.vmem [#allocation12], %s3775_s19  ;;  %s4142_s7 = smul.u32 768, %s5093_s20 }
  0x63   : > { %s522_s10 = sshll.u32 %s515_s25, 4  ;;  %s4143_s30 = smul.u32 12288, %s4949_s29  ;;  %s5195_s10 = int_to_ptr.vmem [resolvable:$true] %s522_s10 }
  0x64   : > { %s3772_s8 = sshll.u32 %s5093_s20, 8  ;;  %s6074_s1 = sld [smem:[#allocation31_spill]] }
  0x65   : > { %s405_s15 = scalar_lea.vmem [#allocation4], %s4142_s7  ;;  %s402_s19 = scalar_lea.sflag [#allocation5], %s5093_s20 }
  0x66   : > { %s412_s17 = sshll.u32 %s405_s15, 4  ;;  %s5205_s17 = int_to_ptr.vmem [resolvable:$true] %s412_s17 }
  0x67   : > { %s5191_s27 = scalar_lea.hbm %s6073_s9, %s6072_s22 }
  0x6a   : > { %s5203_s4 = scalar_lea.hbm %s6074_s1, %s4143_s30  ;;  %s4750_s5 = scalar_lea.hbm %s6074_s1, 24576 }
  0x6b   : > { %s4745_s11 = scalar_lea.hbm %s5203_s4, 12288  ;;  %p4751_p12 = scmp.lt.u32.totalorder %s5203_s4, %s6074_s1 }
  0x6c   : > { %p4746_p7 = scmp.ne.s32.totalorder %s5203_s4, %s4745_s11  ;;  %p4752_p0 = scmp.lt.u32.totalorder %s4750_s5, %s4745_s11 }
  0x6d   : > { %p4754_p13 = scmp.lt.u32.totalorder %s4745_s11, %s5203_s4 }
  0x6e   : > { %p4748_p5 = pnand %p4746_p7, %p5117_p11  ;;  %p4753_p1 = por %p4752_p0, %p4751_p12 }
  0x70   : > { %p4749_p10 = pneg %p4748_p5  ;;  %p4755_p2 = por %p4754_p13, %p4753_p1 }
  0x72   : > { %p4756_p3 = pnand %p4755_p2, %p4749_p10 }
  0x74   : > { %4759 = shalt.err (!%p4756_p3)
}
  0x75   : > { %s4760_s7 = scalar_lea.vmem %s5205_s17, 12288  ;;  %s4959_s13 = smov [#allocation4]  }
  0x76   : > { %p4761_p4 = scmp.ne.s32.totalorder %s5205_s17, %s4760_s7  ;;  %s4765_s0 = sshll.u32 %s4959_s13, 4  ;;  %s4766_s0 = int_to_ptr.vmem [resolvable:$false] %s4765_s0 }
  0x77   : > { %s4767_s25 = scalar_lea.vmem %s4766_s0, 24576  ;;  %p4768_p7 = scmp.lt.s32.totalorder %s5205_s17, %s4766_s0 }
  0x78   : > { %p4763_p6 = pnand %p4761_p4, %p5117_p11  ;;  %p4769_p5 = scmp.lt.s32.totalorder %s4767_s25, %s4760_s7 }
  0x7a   : > { %p4764_p8 = pneg %p4763_p6  ;;  %p4770_p12 = por %p4769_p5, %p4768_p7 }
  0x7c   : > { %p4771_p0 = pnand %p4770_p12, %p4764_p8 }
  0x7e   : > { %4774 = shalt.err (!%p4771_p0)
}
  0x7f   : > { %s4960_s15 = smov 384   ;;  %s4961_s11 = smov 24  }
  0x80   : > { %4168 = dma.hbm_to_vmem [thread:$0]  (!%p5095_p9), %s5203_s4, 12288, %s5205_s17, %s402_s19, %s4960_s15, %s4960_s15, %s4961_s11  }
  0x81   : > { %s4059_s12 = sshll.u32 %s4949_s29, 12  ;;  %s445_s22 = scalar_lea.vmem [#allocation9], %s3772_s8 }
  0x82   : > { %s452_s5 = sshll.u32 %s445_s22, 4  ;;  %s6075_s3 = sld [smem:[#allocation33_spill]]  ;;  %s5239_s5 = int_to_ptr.vmem [resolvable:$true] %s452_s5 }
  0x88   : > { %s5237_s7 = scalar_lea.hbm %s6075_s3, %s4059_s12  ;;  %s4780_s8 = scalar_lea.hbm %s6075_s3, 8192 }
  0x89   : > { %s4775_s13 = scalar_lea.hbm %s5237_s7, 4096  ;;  %p4781_p2 = scmp.lt.u32.totalorder %s5237_s7, %s6075_s3 }
  0x8a   : > { %p4776_p10 = scmp.ne.s32.totalorder %s5237_s7, %s4775_s13  ;;  %p4782_p3 = scmp.lt.u32.totalorder %s4780_s8, %s4775_s13 }
  0x8b   : > { %p4784_p6 = scmp.lt.u32.totalorder %s4775_s13, %s5237_s7 }
  0x8c   : > { %p4778_p1 = pnand %p4776_p10, %p5117_p11  ;;  %p4783_p4 = por %p4782_p3, %p4781_p2 }
  0x8e   : > { %p4779_p13 = pneg %p4778_p1  ;;  %p4785_p8 = por %p4784_p6, %p4783_p4 }
  0x90   : > { %p4786_p7 = pnand %p4785_p8, %p4779_p13 }
  0x92   : > { %4789 = shalt.err (!%p4786_p7)
}
  0x93   : > { %s4790_s0 = scalar_lea.vmem %s5239_s5, 4096  ;;  %s4962_s25 = smov [#allocation9]  }
  0x94   : > { %p4791_p5 = scmp.ne.s32.totalorder %s5239_s5, %s4790_s0  ;;  %s4795_s15 = sshll.u32 %s4962_s25, 4  ;;  %s4796_s15 = int_to_ptr.vmem [resolvable:$false] %s4795_s15 }
  0x95   : > { %s4797_s11 = scalar_lea.vmem %s4796_s15, 8192  ;;  %p4798_p10 = scmp.lt.s32.totalorder %s5239_s5, %s4796_s15 }
  0x96   : > { %p4793_p12 = pnand %p4791_p5, %p5117_p11  ;;  %p4799_p1 = scmp.lt.s32.totalorder %s4797_s11, %s4790_s0 }
  0x98   : > { %p4794_p0 = pneg %p4793_p12  ;;  %p4800_p2 = por %p4799_p1, %p4798_p10 }
  0x9a   : > { %p4801_p3 = pnand %p4800_p2, %p4794_p0 }
  0x9c   : > { %4804 = shalt.err (!%p4801_p3)
}
  0x9d   : > { %s4963_s12 = smov 128   ;;  %s4964_s22 = smov 8  }
  0x9e   : > { %4174 = dma.hbm_to_vmem [thread:$0]  (!%p5095_p9), %s5237_s7, 4096, %s5239_s5, %s5111_s16, %s4963_s12, %s4963_s12, %s4964_s22  }
  0x9f   : > { %s4805_s6 = scalar_lea.hbm %s5191_s27, 8192  ;;  %s4810_s4 = scalar_lea.hbm %s6073_s9, 16384 }
  0xa0   : > { %p4806_p13 = scmp.ne.s32.totalorder %s5191_s27, %s4805_s6  ;;  %p4811_p8 = scmp.lt.u32.totalorder %s5191_s27, %s6073_s9 }
  0xa1   : > { %p4812_p7 = scmp.lt.u32.totalorder %s4810_s4, %s4805_s6  ;;  %p4814_p12 = scmp.lt.u32.totalorder %s4805_s6, %s5191_s27 }
  0xa2   : > { %p4808_p4 = pnand %p4806_p13, %p5117_p11 }
  0xa3   : > { %p4813_p5 = por %p4812_p7, %p4811_p8 }
  0xa4   : > { %p4809_p6 = pneg %p4808_p4 }
  0xa5   : > { %p4815_p0 = por %p4814_p12, %p4813_p5 }
  0xa7   : > { %p4816_p10 = pnand %p4815_p0, %p4809_p6 }
  0xa9   : > { %4819 = shalt.err (!%p4816_p10)
}
  0xaa   : > { %s4820_s16 = scalar_lea.vmem %s5195_s10, 8192  ;;  %s4965_s5 = smov [#allocation12]  }
  0xab   : > { %p4821_p1 = scmp.ne.s32.totalorder %s5195_s10, %s4820_s16  ;;  %s4825_s7 = sshll.u32 %s4965_s5, 4  ;;  %s4826_s7 = int_to_ptr.vmem [resolvable:$false] %s4825_s7 }
  0xac   : > { %s4827_s17 = scalar_lea.vmem %s4826_s7, 16384  ;;  %p4828_p13 = scmp.lt.s32.totalorder %s5195_s10, %s4826_s7 }
  0xad   : > { %p4823_p2 = pnand %p4821_p1, %p5117_p11  ;;  %p4829_p4 = scmp.lt.s32.totalorder %s4827_s17, %s4820_s16 }
  0xaf   : > { %p4824_p3 = pneg %p4823_p2  ;;  %p4830_p8 = por %p4829_p4, %p4828_p13 }
  0xb1   : > { %p4831_p7 = pnand %p4830_p8, %p4824_p3 }
  0xb3   : > { %4834 = shalt.err (!%p4831_p7)
}
  0xb4   : > { %4180 = dma.hbm_to_vmem [thread:$0]  (!%p5095_p9), %s5191_s27, 8192, %s5195_s10, %s5162_s2, %s4963_s12, %s4963_s12, %s4964_s22  }
  0xb5   : > { %p6076_p11 = scmp.ne.s32.totalorder %s6069_s24, 0 }
  0xb6   : > { %s5294_s23 = sand.u32 (!%p6076_p11), 1, %s4937_s26   ;;  %p6077_p6 = scmp.ne.s32.totalorder (!%p6076_p11), %s6064_s18, 0 }
  0xb7   : > { %555 = sbr.rel (%p6076_p11) target bundleno = 3288 (0xcd8), region = 68  ;;  %s558_s0 = scalar_lea.sflag (!%p6076_p11), [#allocation5], %s5294_s23 }
  0xb8   : > { %s4146_s19 = smul.u32 (!%p6076_p11), 768, %s5294_s23 }
  0xba   : > { %s5298_s25 = scalar_lea.vmem (!%p6076_p11), [#allocation4], %s4146_s19 }
  0xbe   : > { %4912 = dma.done.wait (%p6077_p6), %s558_s0, 12288  }
  0xbf   : > { %4914 = vsyncadd (%p6077_p6), %s558_s0, 4294955008  ;;  %s566_s2 = sand.u32 1, %s5071_s14   ;;  %s4147_s21 = smul.u32 6, %s5294_s23 }
  0xc0   : > { %s567_s24 = scalar_lea.sflag [#allocation8], %s566_s2 }
  0xc1   : > { %s5306_s27 = scalar_lea.vmem [#allocation7], %s4147_s21 }
  0xc2   : > { %4916 = dma.done.wait (%p6077_p6), %s567_s24, 4192  }
  0xc3   : > { %4918 = vsyncadd (%p6077_p6), %s567_s24, 4294963104  ;;  %s3782_s10 = sshll.u32 %s5294_s23, 8  ;;  %s6039_s15 = sshll.u32 %s5294_s23, 9 }
  0xc4   : > { %s5314_s11 = scalar_lea.vmem [#allocation9], %s3782_s10  ;;  %s585_s12 = scalar_lea.sflag [#allocation11], %s566_s2 }
  0xc5   : > { %s5318_s22 = scalar_lea.vmem [#allocation10], %s6039_s15 }
  0xc6   : > { %4920 = dma.done.wait (%p6077_p6), %s585_s12, 16384  }
  0xc7   : > { %4922 = vsyncadd (%p6077_p6), %s585_s12, 4294950912  ;;  %p681_p9 = scmp.lt.s32.totalorder %s4945_s28, 1  ;;  %p4182_p5 = scmp.eq.s32.totalorder %s4945_s28, 0 }
  0xc8   : > { %s6078_s18 = sld [smem:[#allocation34_spill]]  ;;  %s6079_s7 = sld [smem:[#allocation35_spill]] }
  0xc9   : > { %s682_s6 = scalar_select %p681_p9, %s4945_s28, 1 }
  0xca   : > { %s6080_s2 = sld [smem:[#allocation36_spill]]  ;;  %s6081_s12 = sld [smem:[#allocation38_spill]] }
  0xcb   : > { %s5327_s30 = sshll.u32 %s682_s6, 1  ;;  %s3788_s13 = sshll.u32 %s682_s6, 2 }
  0xcc   : > { %s6082_s6 = sld [smem:[#allocation40_spill]]  ;;  %s6083_s20 = sld [smem:[#allocation41_spill]] }
  0xcd   : > { %s6084_s5 = sld [smem:[#allocation42_spill]]  ;;  %s4966_s14 = smov [#allocation2]  }
  0xce   : > { %s726_s19 = sshll.u32 %s4966_s14, 4  ;;  %s6085_s24 = sld [smem:[#allocation30_spill]]  ;;  %s727_s19 = int_to_ptr.vmem [resolvable:$true] %s726_s19 }
  0xd0   : > { %s5344_s15 = scalar_lea.vmem %s6081_s12, %s3788_s13 }
  0xd2   : > { %s700_s9 = scalar_lea.vmem %s6082_s6, %s5327_s30  ;;  %s704_s8 = scalar_lea.vmem %s6083_s20, %s5327_s30 }
  0xd3   : > { %s708_s17 = scalar_lea.vmem %s6084_s5, %s5327_s30 }
  0xd4   : > { %s4835_s13 = scalar_lea.hbm %s6085_s24, 1024 }
  0xd5   : > { %p4836_p12 = scmp.ne.s32.totalorder %s6085_s24, %s4835_s13  ;;  %p4841_p1 = scmp.lt.u32.totalorder %s4835_s13, %s6085_s24 }
  0xd7   : > { %p4837_p0 = pnand %p4836_p12, %p4182_p5 }
  0xd9   : > { %p4838_p10 = pneg %p4837_p0 }
  0xdb   : > { %p4843_p2 = pnand %p4841_p1, %p4838_p10 }
  0xdd   : > { %4846 = shalt.err (!%p4843_p2)  }
  0xde   : > { %s4847_s26 = scalar_lea.vmem %s727_s19, 1024  ;;  %p4854_p8 = scmp.lt.s32.totalorder %s727_s19, %s727_s19 }
  0xdf   : > { %p4848_p3 = scmp.ne.s32.totalorder %s727_s19, %s4847_s26  ;;  %p4855_p7 = scmp.lt.s32.totalorder %s4847_s26, %s4847_s26 }
  0xe1   : > { %p4849_p13 = pnand %p4848_p3, %p4182_p5  ;;  %p4856_p11 = por %p4855_p7, %p4854_p8 }
  0xe3   : > { %p4850_p4 = pneg %p4849_p13 }
  0xe5   : > { %p4857_p6 = pnand %p4856_p11, %p4850_p4 }
  0xe7   : > { %4860 = shalt.err (!%p4857_p6)  }
  0xe8   : > { %4159 = dma.hbm_to_vmem [thread:$0]  (%p4182_p5), %s6085_s24, 1024, %s727_s19, [#allocation3] }
  0xe9   : > { %s6086_s21 = sshll.u32 %s5294_s23, 9 }
  0xea   : > { %s5378_s4 = scalar_lea.vmem [#allocation12], %s6086_s21 }
  0xeb   : > { %4924 = dma.done.wait (%p4182_p5), [#allocation3], 1024 }
  0xec   : > { %4926 = vsyncadd (%p4182_p5), [#allocation3], 4294966272  ;;  %v4245_v0 = vld [vmem:[%s5298_s25 + $0x4] ss:$24 sps:$4 sm:$0xff]   ;;  %v4247_v1 = vld [vmem:[%s5298_s25] ss:$24 sps:$4 sm:$0xff]   ;;  %s6088_s16 = scalar_lea.vmem %s6079_s7, %s5327_s30  ;;  %s6089_s13 = scalar_lea.vmem %s6080_s2, %s5327_s30 }
  0xed   : > { %1355 = vmatprep.subr.bf16.mxu0 %v4245_v0  ;;  %v4248_v2 = vld [vmem:[%s5298_s25 + $0x34] ss:$24 sps:$4 sm:$0xff]   ;;  %v4250_v3 = vld [vmem:[%s5298_s25 + $0x30] ss:$24 sps:$4 sm:$0xff]   ;;  %v4251_v4 = vld [vmem:[%s5298_s25 + $0x64] ss:$24 sps:$4 sm:$0xff]  }
  0xee   : > { %1356 = vmatpush1.bf16.msra.mxu0 %v4247_v1  ;;  %v4253_v5 = vld [vmem:[%s5298_s25 + $0x60] ss:$24 sps:$4 sm:$0xff]   ;;  %v4254_v6 = vld [vmem:[%s5298_s25 + $0x94] ss:$24 sps:$4 sm:$0xff]   ;;  %v4256_v7 = vld [vmem:[%s5298_s25 + $0x90] ss:$24 sps:$4 sm:$0xff]  }
  0xef   : > { %1357 = vmatprep.subr.bf16.mxu0 %v4248_v2  ;;  %v4257_v8 = vld [vmem:[%s5298_s25 + $0xc4] ss:$24 sps:$4 sm:$0xff]   ;;  %v4259_v9 = vld [vmem:[%s5298_s25 + $0xc0] ss:$24 sps:$4 sm:$0xff]   ;;  %v4260_v10 = vld [vmem:[%s5298_s25 + $0xf4] ss:$24 sps:$4 sm:$0xff]  }
  0xf0   : > { %v4262_v11 = vld [vmem:[%s5298_s25 + $0xf0] ss:$24 sps:$4 sm:$0xff]   ;;  %v4263_v12 = vld [vmem:[%s5298_s25 + $0x124] ss:$24 sps:$4 sm:$0xff]   ;;  %v4265_v16 = vld [vmem:[%s5298_s25 + $0x120] ss:$24 sps:$4 sm:$0xff]  }
  0xf1   : > { %v736_v13 = vld [vmem:[#allocation2 + $0x8] sm:$0xff]  ;;  %v738_v14 = vld [vmem:[#allocation2 + $0x18] sm:$0xff]  ;;  %v735_v35 = vld [vmem:[#allocation2] sm:$0xff]  ;;  %vm4968_vm0 = vmmov 0   ;;  %vm1616_vm1 = vcmask 130048   ;;  %p4053_p9 = scmp.ne.s32.totalorder %s4945_s28, 1 }
  0xf2   : > { %1358 = vmatpush1.bf16.msra.mxu0 %v4250_v3  ;;  %v5397_v15 = vpack.c.bf16 %v738_v14, %v736_v13  ;;  %v4266_v17 = vld [vmem:[%s5298_s25 + $0x154] ss:$24 sps:$4 sm:$0xff]   ;;  %v4268_v18 = vld [vmem:[%s5298_s25 + $0x150] ss:$24 sps:$4 sm:$0xff]   ;;  %v4269_v19 = vld [vmem:[%s5298_s25 + $0x184] ss:$24 sps:$4 sm:$0xff]   ;;  %v845_v13 = vlaneseq }
  0xf3   : > { %1359 = vmatprep.subr.bf16.mxu0 %v4251_v4  ;;  %v4271_v20 = vld [vmem:[%s5298_s25 + $0x180] ss:$24 sps:$4 sm:$0xff]   ;;  %v4272_v21 = vld [vmem:[%s5298_s25 + $0x1b4] ss:$24 sps:$4 sm:$0xff]   ;;  %v4274_v22 = vld [vmem:[%s5298_s25 + $0x1b0] ss:$24 sps:$4 sm:$0xff]  }
  0xf4   : > { %1387 = vmatprep.mubr.bf16.mxu0 %v5397_v15  ;;  %v4275_v23 = vld [vmem:[%s5298_s25 + $0x1e4] ss:$24 sps:$4 sm:$0xff]   ;;  %v4277_v24 = vld [vmem:[%s5298_s25 + $0x1e0] ss:$24 sps:$4 sm:$0xff]   ;;  %v4278_v25 = vld [vmem:[%s5298_s25 + $0x214] ss:$24 sps:$4 sm:$0xff]  }
  0xf5   : > { %v4280_v26 = vld [vmem:[%s5298_s25 + $0x210] ss:$24 sps:$4 sm:$0xff]   ;;  %v4281_v27 = vld [vmem:[%s5298_s25 + $0x244] ss:$24 sps:$4 sm:$0xff]   ;;  %v4283_v28 = vld [vmem:[%s5298_s25 + $0x240] ss:$24 sps:$4 sm:$0xff]  }
  0xf6   : > { %1360 = vmatpush1.bf16.msra.mxu0 %v4253_v5  ;;  %v4284_v29 = vld [vmem:[%s5298_s25 + $0x274] ss:$24 sps:$4 sm:$0xff]   ;;  %v4286_v30 = vld [vmem:[%s5298_s25 + $0x270] ss:$24 sps:$4 sm:$0xff]   ;;  %v4287_v31 = vld [vmem:[%s5298_s25 + $0x2a4] ss:$24 sps:$4 sm:$0xff]  }
  0xf7   : > { %1361 = vmatprep.subr.bf16.mxu0 %v4254_v6  ;;  %v4289_v32 = vld [vmem:[%s5298_s25 + $0x2a0] ss:$24 sps:$4 sm:$0xff]   ;;  %v4290_v33 = vld [vmem:[%s5298_s25 + $0x2d4] ss:$24 sps:$4 sm:$0xff]   ;;  %v4292_v34 = vld [vmem:[%s5298_s25 + $0x2d0] ss:$24 sps:$4 sm:$0xff]  }
  0xf8   : > { %v737_v36 = vld [vmem:[#allocation2 + $0x10] sm:$0xff]  ;;  %v4295_v37 = vld [vmem:[%s5298_s25 + $0xc] ss:$24 sps:$4 sm:$0xff]   ;;  %v742_v39 = vld [vmem:[#allocation2 + $0x38] sm:$0xff]  ;;  %v5468_v14 = vshrl.u32 %v845_v13, 7 }
  0xf9   : > { %v740_v38 = vld [vmem:[#allocation2 + $0x28] sm:$0xff]  ;;  %v5421_v41 = vpack.c.bf16 %v737_v36, %v735_v35  ;;  %v4298_v42 = vld [vmem:[%s5298_s25 + $0x3c] ss:$24 sps:$4 sm:$0xff]   ;;  %v4296_v44 = vld [vmem:[%s5298_s25 + $0x38] ss:$24 sps:$4 sm:$0xff]  }
  0xfa   : > { %1362 = vmatpush1.bf16.msra.mxu0 %v4256_v7  ;;  %v4293_v40 = vld [vmem:[%s5298_s25 + $0x8] ss:$24 sps:$4 sm:$0xff]   ;;  %v5424_v43 = vpack.c.bf16 %v742_v39, %v740_v38  ;;  %v741_v46 = vld [vmem:[#allocation2 + $0x30] sm:$0xff]  ;;  %v4301_v47 = vld [vmem:[%s5298_s25 + $0x6c] ss:$24 sps:$4 sm:$0xff]  }
  0xfb   : > { %1363 = vmatprep.subr.bf16.mxu0 %v4257_v8  ;;  %v739_v45 = vld [vmem:[#allocation2 + $0x20] sm:$0xff]  ;;  %v4304_v49 = vld [vmem:[%s5298_s25 + $0x9c] ss:$24 sps:$4 sm:$0xff]   ;;  %v4302_v51 = vld [vmem:[%s5298_s25 + $0x98] ss:$24 sps:$4 sm:$0xff]  }
  0xfc   : > { %v4299_v48 = vld [vmem:[%s5298_s25 + $0x68] ss:$24 sps:$4 sm:$0xff]   ;;  %v5432_v50 = vpack.c.bf16 %v741_v46, %v739_v45  ;;  %v4307_v52 = vld [vmem:[%s5298_s25 + $0xcc] ss:$24 sps:$4 sm:$0xff]   ;;  %v4310_v54 = vld [vmem:[%s5298_s25 + $0xfc] ss:$24 sps:$4 sm:$0xff]  }
  0xfd   : > { %v4305_v53 = vld [vmem:[%s5298_s25 + $0xc8] ss:$24 sps:$4 sm:$0xff]   ;;  %v4308_v55 = vld [vmem:[%s5298_s25 + $0xf8] ss:$24 sps:$4 sm:$0xff]   ;;  %v4313_v56 = vld [vmem:[%s5298_s25 + $0x12c] ss:$24 sps:$4 sm:$0xff]  }
  0xfe   : > { %1364 = vmatpush1.bf16.msra.mxu0 %v4259_v9  ;;  %v4311_v57 = vld [vmem:[%s5298_s25 + $0x128] ss:$24 sps:$4 sm:$0xff]   ;;  %v4316_v58 = vld [vmem:[%s5298_s25 + $0x15c] ss:$24 sps:$4 sm:$0xff]   ;;  %v4314_v59 = vld [vmem:[%s5298_s25 + $0x158] ss:$24 sps:$4 sm:$0xff]  }
  0xff   : > { %1365 = vmatprep.subr.bf16.mxu0 %v4260_v10  ;;  %v4319_v60 = vld [vmem:[%s5298_s25 + $0x18c] ss:$24 sps:$4 sm:$0xff]   ;;  %v4317_v61 = vld [vmem:[%s5298_s25 + $0x188] ss:$24 sps:$4 sm:$0xff]   ;;  %v4322_v62 = vld [vmem:[%s5298_s25 + $0x1bc] ss:$24 sps:$4 sm:$0xff]  }
 0x100   : > { %v4320_v63 = vld [vmem:[%s5298_s25 + $0x1b8] ss:$24 sps:$4 sm:$0xff]   ;;  %v4325_v0 = vld [vmem:[%s5298_s25 + $0x1ec] ss:$24 sps:$4 sm:$0xff]   ;;  %v4323_v1 = vld [vmem:[%s5298_s25 + $0x1e8] ss:$24 sps:$4 sm:$0xff]  }
 0x101   : > { %v4328_v2 = vld [vmem:[%s5298_s25 + $0x21c] ss:$24 sps:$4 sm:$0xff]   ;;  %v4326_v3 = vld [vmem:[%s5298_s25 + $0x218] ss:$24 sps:$4 sm:$0xff]   ;;  %v4331_v4 = vld [vmem:[%s5298_s25 + $0x24c] ss:$24 sps:$4 sm:$0xff]  }
 0x102   : > { %1366 = vmatpush1.bf16.msra.mxu0 %v4262_v11  ;;  %v4329_v5 = vld [vmem:[%s5298_s25 + $0x248] ss:$24 sps:$4 sm:$0xff]   ;;  %v4334_v6 = vld [vmem:[%s5298_s25 + $0x27c] ss:$24 sps:$4 sm:$0xff]   ;;  %v4332_v7 = vld [vmem:[%s5298_s25 + $0x278] ss:$24 sps:$4 sm:$0xff]  }
 0x103   : > { %1367 = vmatprep.subr.bf16.mxu0 %v4263_v12  ;;  %v4337_v8 = vld [vmem:[%s5298_s25 + $0x2ac] ss:$24 sps:$4 sm:$0xff]   ;;  %v4335_v9 = vld [vmem:[%s5298_s25 + $0x2a8] ss:$24 sps:$4 sm:$0xff]   ;;  %v4340_v10 = vld [vmem:[%s5298_s25 + $0x2dc] ss:$24 sps:$4 sm:$0xff]  }
 0x104   : > { %v4338_v11 = vld [vmem:[%s5298_s25 + $0x2d8] ss:$24 sps:$4 sm:$0xff]   ;;  %v4967_v12 = vmov 0.0   ;;  %v4343_v13 = vld [vmem:[%s5298_s25 + $0x14] ss:$24 sps:$4 sm:$0xff]  }
 0x105   : > { %4078 = vmatprep.subr.bf16.mxu1 %v4967_v12  ;;  %4080 = vmatprep.mubr.msk.bf16.mxu1 %vm4968_vm0, %v4967_v12 }
 0x106   : > { %1368 = vmatpush1.bf16.msra.mxu0 %v4265_v16  ;;  %v5471_v16 = vsub.s32 0, %v5468_v14 }
 0x107   : > { %1369 = vmatprep.subr.bf16.mxu0 %v4266_v17  ;;  %v5474_v17 = vld [vmem:[%s5306_s27] sm:$0x3f]  ;;  %s6087_s27 = scalar_lea.vmem %s6078_s18, %s5327_s30 }
 0x10a   : > { %1370 = vmatpush1.bf16.msra.mxu0 %v4268_v18  ;;  %v5477_v18 = vsub.s32 1, %v5468_v14 }
 0x10b   : > { %1371 = vmatprep.subr.bf16.mxu0 %v4269_v19 }
 0x10c   : > { %v852_v19 = vrot.slane %v5474_v17, %v5477_v18 }
 0x10e   : > { %1372 = vmatpush1.bf16.msra.mxu0 %v4271_v20 }
 0x10f   : > { %1373 = vmatprep.subr.bf16.mxu0 %v4272_v21 }
 0x112   : > { %1374 = vmatpush1.bf16.msra.mxu0 %v4274_v22 }
 0x113   : > { %1375 = vmatprep.subr.bf16.mxu0 %v4275_v23 }
 0x116   : > { %1376 = vmatpush1.bf16.msra.mxu0 %v4277_v24 }
 0x117   : > { %1377 = vmatprep.subr.bf16.mxu0 %v4278_v25 }
 0x11a   : > { %1378 = vmatpush1.bf16.msra.mxu0 %v4280_v26 }
 0x11b   : > { %1379 = vmatprep.subr.bf16.mxu0 %v4281_v27 }
 0x11e   : > { %1380 = vmatpush1.bf16.msra.mxu0 %v4283_v28 }
 0x11f   : > { %1381 = vmatprep.subr.bf16.mxu0 %v4284_v29 }
 0x122   : > { %1382 = vmatpush1.bf16.msra.mxu0 %v4286_v30 }
 0x123   : > { %1383 = vmatprep.subr.bf16.mxu0 %v4287_v31 }
 0x126   : > { %1384 = vmatpush1.bf16.msra.mxu0 %v4289_v32 }
 0x127   : > { %1385 = vmatprep.subr.bf16.mxu0 %v4290_v33 }
 0x12a   : > { %1386 = vmatpush1.bf16.msra.mxu0 %v4292_v34 }
 0x12b   : > { %1408 = vmatprep.subr.bf16.mxu0 %v4295_v37 }
 0x12d   : > { %1388 = vmatmul.mubr.bf16.vlgmr.msra.gmra.mrb[0].mxu0 %v5421_v41 }
 0x12e   : > { %1409 = vmatpush1.bf16.msra.mxu0 %v4293_v40  ;;  %1397 = vmatprep.mubr.bf16.mxu0 %v5424_v43 }
 0x12f   : > { %1410 = vmatprep.subr.bf16.mxu0 %v4298_v42 }
 0x132   : > { %1411 = vmatpush1.bf16.msra.mxu0 %v4296_v44 }
 0x133   : > { %1412 = vmatprep.subr.bf16.mxu0 %v4301_v47 }
 0x135   : > { %1398 = vmatmul.mubr.bf16.gmra.mrb[4].mxu0 %v5432_v50 }
 0x136   : > { %1413 = vmatpush1.bf16.msra.mxu0 %v4299_v48  ;;  %1440 = vmatprep.mubr.bf16.mxu0 %v5397_v15 }
 0x137   : > { %1414 = vmatprep.subr.bf16.mxu0 %v4304_v49 }
 0x13a   : > { %1415 = vmatpush1.bf16.msra.mxu0 %v4302_v51  ;;  %v855_v51 = vsub.s32 2, %v5468_v14 }
 0x13b   : > { %1416 = vmatprep.subr.bf16.mxu0 %v4307_v52  ;;  %v859_v52 = vsub.s32 3, %v5468_v14 }
 0x13e   : > { %1417 = vmatpush1.bf16.msra.mxu0 %v4305_v53  ;;  %v856_v53 = vrot.slane %v5474_v17, %v855_v51 }
 0x13f   : > { %1418 = vmatprep.subr.bf16.mxu0 %v4310_v54 }
 0x142   : > { %1419 = vmatpush1.bf16.msra.mxu0 %v4308_v55  ;;  %v860_v55 = vrot.slane %v5474_v17, %v859_v52 }
 0x143   : > { %1420 = vmatprep.subr.bf16.mxu0 %v4313_v56 }
 0x146   : > { %1421 = vmatpush1.bf16.msra.mxu0 %v4311_v57 }
 0x147   : > { %1422 = vmatprep.subr.bf16.mxu0 %v4316_v58 }
 0x14a   : > { %1423 = vmatpush1.bf16.msra.mxu0 %v4314_v59 }
 0x14b   : > { %1424 = vmatprep.subr.bf16.mxu0 %v4319_v60 }
 0x14e   : > { %1425 = vmatpush1.bf16.msra.mxu0 %v4317_v61 }
 0x14f   : > { %1426 = vmatprep.subr.bf16.mxu0 %v4322_v62 }
 0x152   : > { %1427 = vmatpush1.bf16.msra.mxu0 %v4320_v63 }
 0x153   : > { %1428 = vmatprep.subr.bf16.mxu0 %v4325_v0 }
 0x156   : > { %1429 = vmatpush1.bf16.msra.mxu0 %v4323_v1 }
 0x157   : > { %1430 = vmatprep.subr.bf16.mxu0 %v4328_v2 }
 0x15a   : > { %1431 = vmatpush1.bf16.msra.mxu0 %v4326_v3 }
 0x15b   : > { %1432 = vmatprep.subr.bf16.mxu0 %v4331_v4 }
 0x15e   : > { %1433 = vmatpush1.bf16.msra.mxu0 %v4329_v5 }
 0x15f   : > { %1434 = vmatprep.subr.bf16.mxu0 %v4334_v6 }
 0x162   : > { %1435 = vmatpush1.bf16.msra.mxu0 %v4332_v7 }
 0x163   : > { %1436 = vmatprep.subr.bf16.mxu0 %v4337_v8 }
 0x166   : > { %1437 = vmatpush1.bf16.msra.mxu0 %v4335_v9 }
 0x167   : > { %1438 = vmatprep.subr.bf16.mxu0 %v4340_v10 }
 0x16a   : > { %1439 = vmatpush1.bf16.msra.mxu0 %v4338_v11  ;;  %v4341_v11 = vld [vmem:[%s5298_s25 + $0x10] ss:$24 sps:$4 sm:$0xff]  }
 0x16b   : > { %1461 = vmatprep.subr.bf16.mxu0 %v4343_v13 }
 0x16d   : > { %1441 = vmatmul.mubr.bf16.vlgmr.msra.gmra.mrb[8].mxu0 %v5421_v41 }
 0x16e   : > { %1450 = vmatprep.mubr.bf16.mxu0 %v5424_v43  ;;  %1462 = vmatpush1.bf16.msra.mxu0 %v4341_v11 }
 0x175   : > { %1451 = vmatmul.mubr.bf16.gmra.mrb[12].mxu0 %v5432_v50 }
 0x176   : > { %1493 = vmatprep.mubr.bf16.mxu0 %v5397_v15  ;;  %v848_v15 = vrot.slane %v5474_v17, %v5471_v16 }
 0x200   : > { %v1389_v20 = vpop.f32.mrb[0].mxu0 }
 0x201   : > { %v1390_v21 = vadd.f32 %v1389_v20, %v848_v15  ;;  %v1391_v22 = vpop.f32.mrb[1].mxu0  ;;  %v4349_v20 = vld [vmem:[%s5298_s25 + $0x74] ss:$24 sps:$4 sm:$0xff]  }
 0x202   : > { %v1392_v23 = vadd.f32 %v1391_v22, %v852_v19  ;;  %v1393_v24 = vpop.f32.mrb[2].mxu0  ;;  %v4352_v22 = vld [vmem:[%s5298_s25 + $0xa4] ss:$24 sps:$4 sm:$0xff]  }
 0x203   : > { %v1514_v25 = vmul.f32 0.088388346, %v1390_v21  ;;  %v1394_v26 = vadd.f32 %v1393_v24, %v848_v15  ;;  %v1395_v27 = vpop.f32.mrb[3].mxu0  ;;  %v4347_v21 = vld [vmem:[%s5298_s25 + $0x70] ss:$24 sps:$4 sm:$0xff]  }
 0x204   : > { %v1396_v28 = vadd.f32 %v1395_v27, %v852_v19  ;;  %v5483_v30 = vmul.f32 0.088388346, %v1392_v23  ;;  %v4350_v23 = vld [vmem:[%s5298_s25 + $0xa0] ss:$24 sps:$4 sm:$0xff]   ;;  %v4355_v24 = vld [vmem:[%s5298_s25 + $0xd4] ss:$24 sps:$4 sm:$0xff]  }
 0x205   : > { %v1516_v29 = vmul.f32 0.088388346, %v1394_v26  ;;  %v4358_v26 = vld [vmem:[%s5298_s25 + $0x104] ss:$24 sps:$4 sm:$0xff]   ;;  %v4356_v27 = vld [vmem:[%s5298_s25 + $0x100] ss:$24 sps:$4 sm:$0xff]  }
 0x206   : > { %v5485_v31 = vmul.f32 0.088388346, %v1396_v28  ;;  %v4361_v28 = vld [vmem:[%s5298_s25 + $0x134] ss:$24 sps:$4 sm:$0xff]  }
 0x207   : > { %v1522_v32 = vpack.c.bf16 %v1516_v29, %v1514_v25  ;;  %v4353_v25 = vld [vmem:[%s5298_s25 + $0xd0] ss:$24 sps:$4 sm:$0xff]  }
 0x208   : > { %v1523_v33 = vpack.c.bf16 %v5485_v31, %v5483_v30  ;;  %v1399_v34 = vpop.f32.mrb[4].mxu0  ;;  %v4359_v29 = vld [vmem:[%s5298_s25 + $0x130] ss:$24 sps:$4 sm:$0xff]  }
 0x209   : > { %v1400_v35 = vadd.f32 %v1399_v34, %v848_v15  ;;  %v1401_v36 = vpop.f32.mrb[5].mxu0  ;;  %v4362_v34 = vld [vmem:[%s5298_s25 + $0x160] ss:$24 sps:$4 sm:$0xff]  }
 0x20a   : > { %v1402_v37 = vadd.f32 %v1401_v36, %v852_v19  ;;  %v1403_v38 = vpop.f32.mrb[6].mxu0  ;;  %v4365_v36 = vld [vmem:[%s5298_s25 + $0x190] ss:$24 sps:$4 sm:$0xff]  }
 0x20b   : > { %v1518_v39 = vmul.f32 0.088388346, %v1400_v35  ;;  %v1404_v40 = vadd.f32 %v1403_v38, %v848_v15  ;;  %v1405_v42 = vpop.f32.mrb[7].mxu0  ;;  %v4346_v15 = vld [vmem:[%s5298_s25 + $0x44] ss:$24 sps:$4 sm:$0xff]  }
 0x20c   : > { %v5489_v44 = vmul.f32 0.088388346, %v1402_v37  ;;  %v1406_v45 = vadd.f32 %v1405_v42, %v852_v19  ;;  %v4344_v19 = vld [vmem:[%s5298_s25 + $0x40] ss:$24 sps:$4 sm:$0xff]   ;;  %1463 = vmatprep.subr.bf16.mxu0 %v4346_v15  ;;  %v4367_v35 = vld [vmem:[%s5298_s25 + $0x194] ss:$24 sps:$4 sm:$0xff]  }
 0x20d   : > { %v1520_v46 = vmul.f32 0.088388346, %v1404_v40  ;;  %1464 = vmatpush1.bf16.msra.mxu0 %v4344_v19  ;;  %v4370_v37 = vld [vmem:[%s5298_s25 + $0x1c4] ss:$24 sps:$4 sm:$0xff]   ;;  %v4368_v38 = vld [vmem:[%s5298_s25 + $0x1c0] ss:$24 sps:$4 sm:$0xff]  }
 0x20e   : > { %v5491_v47 = vmul.f32 0.088388346, %v1406_v45  ;;  %1465 = vmatprep.subr.bf16.mxu0 %v4349_v20  ;;  %v4371_v40 = vld [vmem:[%s5298_s25 + $0x1f0] ss:$24 sps:$4 sm:$0xff]   ;;  %v4376_v42 = vld [vmem:[%s5298_s25 + $0x224] ss:$24 sps:$4 sm:$0xff]  }
 0x20f   : > { %v1524_v48 = vpack.c.bf16 %v1520_v46, %v1518_v39  ;;  %v4373_v39 = vld [vmem:[%s5298_s25 + $0x1f4] ss:$24 sps:$4 sm:$0xff]   ;;  %v4374_v45 = vld [vmem:[%s5298_s25 + $0x220] ss:$24 sps:$4 sm:$0xff]  }
 0x210   : > { %v1525_v49 = vpack.c.bf16 %v5491_v47, %v5489_v44  ;;  %v4379_v46 = vld [vmem:[%s5298_s25 + $0x254] ss:$24 sps:$4 sm:$0xff]  }
 0x211   : > { %1466 = vmatpush1.bf16.msra.mxu0 %v4347_v21 }
 0x212   : > { %1467 = vmatprep.subr.bf16.mxu0 %v4352_v22 }
 0x215   : > { %1468 = vmatpush1.bf16.msra.mxu0 %v4350_v23 }
 0x216   : > { %1469 = vmatprep.subr.bf16.mxu0 %v4355_v24 }
 0x219   : > { %1470 = vmatpush1.bf16.msra.mxu0 %v4353_v25 }
 0x21a   : > { %1471 = vmatprep.subr.bf16.mxu0 %v4358_v26 }
 0x21d   : > { %1472 = vmatpush1.bf16.msra.mxu0 %v4356_v27 }
 0x21e   : > { %1473 = vmatprep.subr.bf16.mxu0 %v4361_v28 }
 0x221   : > { %1474 = vmatpush1.bf16.msra.mxu0 %v4359_v29 }
 0x240   : > { %v1442_v54 = vpop.f32.mrb[8].mxu0 }
 0x241   : > { %v1444_v56 = vpop.f32.mrb[9].mxu0  ;;  %v1443_v58 = vadd.f32 %v1442_v54, %v856_v53  ;;  %v4380_v54 = vld [vmem:[%s5298_s25 + $0x280] ss:$24 sps:$4 sm:$0xff]  }
 0x242   : > { %v1446_v57 = vpop.f32.mrb[10].mxu0  ;;  %v5503_v61 = vadd.f32 %v1444_v56, %v860_v55  ;;  %v4383_v56 = vld [vmem:[%s5298_s25 + $0x2b0] ss:$24 sps:$4 sm:$0xff]  }
 0x243   : > { %v1447_v59 = vadd.f32 %v1446_v57, %v856_v53  ;;  %v1448_v60 = vpop.f32.mrb[11].mxu0  ;;  %v4388_v57 = vld [vmem:[%s5298_s25 + $0x2e4] ss:$24 sps:$4 sm:$0xff]  }
 0x244   : > { %v5505_v62 = vadd.f32 %v1448_v60, %v860_v55 }
 0x245   : > { %v1526_v63 = vpack.c.bf16 %v1447_v59, %v1443_v58  ;;  %v4386_v58 = vld [vmem:[%s5298_s25 + $0x2e0] ss:$24 sps:$4 sm:$0xff]  }
 0x246   : > { %v1527_v0 = vpack.c.bf16 %v5505_v62, %v5503_v61 }
 0x247   : > { %4079 = vmatpush3.bf16.xpose.msra.mxu1 %v1526_v63 }
 0x248   : > { %v1452_v1 = vpop.f32.mrb[12].mxu0  ;;  %4084 = vmatprep.subr.bf16.mxu1 %v4967_v12 }
 0x249   : > { %v1454_v2 = vpop.f32.mrb[13].mxu0  ;;  %v1453_v4 = vadd.f32 %v1452_v1, %v856_v53 }
 0x24a   : > { %v1456_v3 = vpop.f32.mrb[14].mxu0  ;;  %v5510_v7 = vadd.f32 %v1454_v2, %v860_v55 }
 0x24b   : > { %v1457_v5 = vadd.f32 %v1456_v3, %v856_v53  ;;  %v1458_v6 = vpop.f32.mrb[15].mxu0  ;;  %v4382_v53 = vld [vmem:[%s5298_s25 + $0x284] ss:$24 sps:$4 sm:$0xff]  }
 0x24c   : > { %v5512_v8 = vadd.f32 %v1458_v6, %v860_v55  ;;  %v4385_v55 = vld [vmem:[%s5298_s25 + $0x2b4] ss:$24 sps:$4 sm:$0xff]  }
 0x24d   : > { %v1528_v9 = vpack.c.bf16 %v1457_v5, %v1453_v4 }
 0x24e   : > { %v1529_v10 = vpack.c.bf16 %v5512_v8, %v5510_v7  ;;  %4081 = vmatmul.mubr.bf16.vlgmr.msra.gmra.mrb[0].mxu1 %v1522_v32  ;;  %v4364_v32 = vld [vmem:[%s5298_s25 + $0x164] ss:$24 sps:$4 sm:$0xff]  }
 0x24f   : > { %4085 = vmatpush3.bf16.xpose.msra.mxu1 %v1528_v9  ;;  %4086 = vmatprep.mubr.msk.bf16.mxu1 %vm4968_vm0, %v4967_v12 }
 0x250   : > { %4090 = vmatprep.subr.bf16.mxu1 %v4967_v12  ;;  %1475 = vmatprep.subr.bf16.mxu0 %v4364_v32 }
 0x251   : > { %1476 = vmatpush1.bf16.msra.mxu0 %v4362_v34 }
 0x252   : > { %1477 = vmatprep.subr.bf16.mxu0 %v4367_v35 }
 0x255   : > { %1478 = vmatpush1.bf16.msra.mxu0 %v4365_v36 }
 0x256   : > { %4087 = vmatmul.mubr.bf16.vlgmr.msra.gmra.mrb[4].mxu1 %v1524_v48  ;;  %1479 = vmatprep.subr.bf16.mxu0 %v4370_v37  ;;  %v4377_v48 = vld [vmem:[%s5298_s25 + $0x250] ss:$24 sps:$4 sm:$0xff]  }
 0x257   : > { %4092 = vmatprep.mubr.msk.bf16.mxu1 %vm4968_vm0, %v4967_v12 }
 0x259   : > { %1480 = vmatpush1.bf16.msra.mxu0 %v4368_v38  ;;  %v863_v38 = vsub.s32 4, %v5468_v14 }
 0x25a   : > { %1481 = vmatprep.subr.bf16.mxu0 %v4373_v39 }
 0x25d   : > { %1482 = vmatpush1.bf16.msra.mxu0 %v4371_v40  ;;  %v867_v40 = vsub.s32 5, %v5468_v14 }
 0x25e   : > { %1483 = vmatprep.subr.bf16.mxu0 %v4376_v42 }
 0x261   : > { %1484 = vmatpush1.bf16.msra.mxu0 %v4374_v45  ;;  %v864_v45 = vrot.slane %v5474_v17, %v863_v38 }
 0x262   : > { %1485 = vmatprep.subr.bf16.mxu0 %v4379_v46  ;;  %v868_v46 = vrot.slane %v5474_v17, %v867_v40 }
 0x265   : > { %1486 = vmatpush1.bf16.msra.mxu0 %v4377_v48 }
 0x266   : > { %1487 = vmatprep.subr.bf16.mxu0 %v4382_v53 }
 0x269   : > { %1488 = vmatpush1.bf16.msra.mxu0 %v4380_v54 }
 0x26a   : > { %1489 = vmatprep.subr.bf16.mxu0 %v4385_v55 }
 0x26d   : > { %1490 = vmatpush1.bf16.msra.mxu0 %v4383_v56 }
 0x26e   : > { %1491 = vmatprep.subr.bf16.mxu0 %v4388_v57 }
 0x271   : > { %1492 = vmatpush1.bf16.msra.mxu0 %v4386_v58 }
 0x274   : > { %1494 = vmatmul.mubr.bf16.vlgmr.msra.gmra.mrb[16].mxu0 %v5421_v41 }
 0x275   : > { %1503 = vmatprep.mubr.bf16.mxu0 %v5424_v43 }
 0x27c   : > { %1504 = vmatmul.mubr.bf16.gmra.mrb[20].mxu0 %v5432_v50 }
 0x321   : > { %v1568_v59 = vpop.f32.mrb[0].mxu1 }
 0x322   : > { %v4082_v60 = vpop.f32.mrb[1].mxu1  ;;  %v1617_v63 = vsel %vm1616_vm1, %v1568_v59, -inf }
 0x323   : > { %1618 = vmax.xlane.f32.xlu0 %v1617_v63  ;;  %v1571_v1 = vpop.f32.mrb[2].mxu1 }
 0x324   : > { %v4083_v2 = vpop.f32.mrb[3].mxu1  ;;  %v1620_v3 = vsel %vm1616_vm1, %v1571_v1, -inf }
 0x327   : > { %1621 = vmax.xlane.f32.xlu0 %v1620_v3 }
 0x329   : > { %v1609_v4 = vpop.f32.mrb[4].mxu1 }
 0x32a   : > { %v4088_v5 = vpop.f32.mrb[5].mxu1  ;;  %v1623_v6 = vsel %vm1616_vm1, %v1609_v4, -inf }
 0x32b   : > { %1624 = vmax.xlane.f32.xlu1 %v1623_v6  ;;  %v1612_v41 = vpop.f32.mrb[6].mxu1 }
 0x32c   : > { %v4089_v43 = vpop.f32.mrb[7].mxu1  ;;  %v1626_v50 = vsel %vm1616_vm1, %v1612_v41, -inf }
 0x32f   : > { %1627 = vmax.xlane.f32.xlu1 %v1626_v50 }
 0x347   : > { %v1495_v39 = vpop.f32.mrb[16].mxu0 }
 0x348   : > { %v1497_v42 = vpop.f32.mrb[17].mxu0  ;;  %v1496_v54 = vadd.f32 %v1495_v39, %v864_v45 }
 0x349   : > { %v1499_v48 = vpop.f32.mrb[18].mxu0  ;;  %v1498_v55 = vadd.f32 %v1497_v42, %v868_v46 }
 0x34a   : > { %v1501_v53 = vpop.f32.mrb[19].mxu0  ;;  %v1500_v56 = vadd.f32 %v1499_v48, %v864_v45 }
 0x34b   : > { %v1502_v57 = vadd.f32 %v1501_v53, %v868_v46 }
 0x34c   : > { %v1530_v58 = vpack.c.bf16 %v1500_v56, %v1496_v54 }
 0x34e   : > { %4091 = vmatpush3.bf16.msra.mxu1 %v1530_v58 }
 0x34f   : > { %v1505_v60 = vpop.f32.mrb[20].mxu0  ;;  %4096 = vmatprep.subr.bf16.mxu1 %v4967_v12 }
 0x350   : > { %v1507_v63 = vpop.f32.mrb[21].mxu0  ;;  %v1506_v3 = vadd.f32 %v1505_v60, %v864_v45 }
 0x3b0   : > { %v1619_v9 = vpop.xlane.xlu0 %1618 }
 0x3b1   : > { %v1629_v11 = vsub.f32 %v1568_v59, %v1619_v9  ;;  %v1531_v59 = vpack.c.bf16 %v1502_v57, %v1498_v55 }
 0x3b3   : > { %v1633_v13 = vmul.f32 1.442695, %v1629_v11 }
 0x3b4   : > { %v1622_v15 = vpop.xlane.xlu0 %1621 }
 0x3b5   : > { %4629 = vpow2.f32 %v1633_v13  ;;  %v1630_v19 = vsub.f32 %v1571_v1, %v1622_v15  ;;  %v1509_v1 = vpop.f32.mrb[22].mxu0 }
 0x3b6   : > { %v1511_v2 = vpop.f32.mrb[23].mxu0  ;;  %v1510_v5 = vadd.f32 %v1509_v1, %v864_v45 }
 0x3b7   : > { %v1635_v20 = vmul.f32 1.442695, %v1630_v19  ;;  %v5571_v17 = vadd.f32 %v1511_v2, %v868_v46 }
 0x3b8   : > { %v1625_v21 = vpop.xlane.xlu1 %1624  ;;  %v1532_v6 = vpack.c.bf16 %v1510_v5, %v1506_v3 }
 0x3b9   : > { %4631 = vpow2.f32 %v1635_v20  ;;  %v1631_v22 = vsub.f32 %v1609_v4, %v1625_v21  ;;  %v5569_v4 = vadd.f32 %v1507_v63, %v868_v46 }
 0x3bb   : > { %v1637_v23 = vmul.f32 1.442695, %v1631_v22 }
 0x3bc   : > { %v1628_v24 = vpop.xlane.xlu1 %1627 }
 0x3bd   : > { %4633 = vpow2.f32 %v1637_v23  ;;  %v1632_v25 = vsub.f32 %v1612_v41, %v1628_v24  ;;  %v1533_v41 = vpack.c.bf16 %v5571_v17, %v5569_v4 }
 0x3bf   : > { %v4630_v26 = vpop.eup %4629  ;;  %v1639_v27 = vmul.f32 1.442695, %v1632_v25 }
 0x3c0   : > { %v1641_v28 = vsel %vm1616_vm1, %v4630_v26, 0.0 }
 0x3c1   : > { %4635 = vpow2.f32 %v1639_v27  ;;  %1642 = vadd.xlane.f32.xlu0 %v1641_v28 }
 0x3c3   : > { %v4632_v29 = vpop.eup %4631 }
 0x3c4   : > { %v1644_v32 = vsel %vm1616_vm1, %v4632_v29, 0.0 }
 0x3c5   : > { %1645 = vadd.xlane.f32.xlu1 %v1644_v32 }
 0x3c7   : > { %v4634_v34 = vpop.eup %4633 }
 0x3c8   : > { %v1647_v35 = vsel %vm1616_vm1, %v4634_v34, 0.0 }
 0x3c9   : > { %1648 = vadd.xlane.f32.xlu0 %v1647_v35 }
 0x3cb   : > { %v4636_v36 = vpop.eup %4635 }
 0x3cc   : > { %v1650_v37 = vsel %vm1616_vm1, %v4636_v36, 0.0 }
 0x3cd   : > { %1651 = vadd.xlane.f32.xlu1 %v1650_v37 }
 0x44e   : > { %v1643_v43 = vpop.xlane.xlu0 %1642 }
 0x44f   : > { %4637 = vrcp.f32 %v1643_v43 }
 0x452   : > { %v1646_v50 = vpop.xlane.xlu1 %1645 }
 0x453   : > { %4639 = vrcp.f32 %v1646_v50  ;;  %v4389_v50 = vld [vmem:[%s5314_s11] ss:$8 sps:$4 sm:$0xff]  }
 0x456   : > { %v1649_v9 = vpop.xlane.xlu0 %1648 }
 0x457   : > { %4641 = vrcp.f32 %v1649_v9  ;;  %v4391_v9 = vld [vmem:[%s5314_s11 + $0x4] ss:$8 sps:$4 sm:$0xff]  }
 0x458   : > { %2175 = vmatprep.subr.bf16.mxu0 %v4391_v9 }
 0x459   : > { %v4638_v13 = vpop.eup %4637  ;;  %2176 = vmatpush1.bf16.msra.mxu0 %v4389_v50 }
 0x45a   : > { %v1652_v11 = vpop.xlane.xlu1 %1651  ;;  %v1657_v19 = vmul.f32 %v4638_v13, %v4630_v26  ;;  %v4392_v13 = vld [vmem:[%s5314_s11 + $0x10] ss:$8 sps:$4 sm:$0xff]  }
 0x45b   : > { %4643 = vrcp.f32 %v1652_v11  ;;  %v4394_v11 = vld [vmem:[%s5314_s11 + $0x14] ss:$8 sps:$4 sm:$0xff]  }
 0x45c   : > { %2177 = vmatprep.subr.bf16.mxu0 %v4394_v11 }
 0x45d   : > { %v4640_v15 = vpop.eup %4639  ;;  %2178 = vmatpush1.bf16.msra.mxu0 %v4392_v13  ;;  %v2003_v13 = vld [vmem:[%s6087_s27] sm:$0x3] }
 0x45e   : > { %v1658_v20 = vmul.f32 %v4640_v15, %v4632_v29  ;;  %v4397_v15 = vld [vmem:[%s5314_s11 + $0x24] ss:$8 sps:$4 sm:$0xff]  }
 0x45f   : > { %2179 = vmatprep.subr.bf16.mxu0 %v4397_v15  ;;  %v2008_v15 = vrot.slane %v2003_v13, %v5471_v16 }
 0x460   : > { %v1661_v21 = vpack.c.bf16 %v1658_v20, %v1657_v19  ;;  %v4395_v19 = vld [vmem:[%s5314_s11 + $0x20] ss:$8 sps:$4 sm:$0xff]   ;;  %v4400_v20 = vld [vmem:[%s5314_s11 + $0x34] ss:$8 sps:$4 sm:$0xff]  }
 0x461   : > { %v4642_v22 = vpop.eup %4641  ;;  %2180 = vmatpush1.bf16.msra.mxu0 %v4395_v19 }
 0x462   : > { %4093 = vmatmul.mubr.msk.bf16.vlgmr.msra.gmra.mrb[8].mxu1 %vm1616_vm1, %v1661_v21  ;;  %v1659_v24 = vmul.f32 %v4642_v22, %v4634_v34  ;;  %v4398_v21 = vld [vmem:[%s5314_s11 + $0x30] ss:$8 sps:$4 sm:$0xff]   ;;  %2181 = vmatprep.subr.bf16.mxu0 %v4400_v20  ;;  %v4403_v22 = vld [vmem:[%s5314_s11 + $0x44] ss:$8 sps:$4 sm:$0xff]  }
 0x463   : > { %4097 = vmatpush3.bf16.msra.mxu1 %v1532_v6  ;;  %4098 = vmatprep.mubr.msk.bf16.mxu1 %vm4968_vm0, %v4967_v12 }
 0x464   : > { %4102 = vmatprep.subr.bf16.mxu1 %v4967_v12 }
 0x465   : > { %v4644_v23 = vpop.eup %4643  ;;  %2182 = vmatpush1.bf16.msra.mxu0 %v4398_v21 }
 0x466   : > { %v1660_v25 = vmul.f32 %v4644_v23, %v4636_v36  ;;  %v4401_v23 = vld [vmem:[%s5314_s11 + $0x40] ss:$8 sps:$4 sm:$0xff]   ;;  %2183 = vmatprep.subr.bf16.mxu0 %v4403_v22  ;;  %v4677_v22 = vld [vmem:[#allocation2] sm:$0xff] }
 0x468   : > { %v1662_v27 = vpack.c.bf16 %v1660_v25, %v1659_v24  ;;  %v4406_v24 = vld [vmem:[%s5314_s11 + $0x54] ss:$8 sps:$4 sm:$0xff]   ;;  %v4404_v25 = vld [vmem:[%s5314_s11 + $0x50] ss:$8 sps:$4 sm:$0xff]  }
 0x469   : > { %2184 = vmatpush1.bf16.msra.mxu0 %v4401_v23 }
 0x46a   : > { %4099 = vmatmul.mubr.msk.bf16.vlgmr.msra.gmra.mrb[12].mxu1 %vm1616_vm1, %v1662_v27  ;;  %2185 = vmatprep.subr.bf16.mxu0 %v4406_v24  ;;  %v4409_v27 = vld [vmem:[%s5314_s11 + $0x64] ss:$8 sps:$4 sm:$0xff]  }
 0x46b   : > { %4104 = vmatprep.mubr.msk.bf16.mxu1 %vm4968_vm0, %v4967_v12 }
 0x46c   : > { %4103 = vmatpush3.bf16.xpose.msra.mxu1 %v1527_v0 }
 0x46d   : > { %4108 = vmatprep.subr.bf16.mxu1 %v4967_v12  ;;  %2186 = vmatpush1.bf16.msra.mxu0 %v4404_v25 }
 0x46e   : > { %2187 = vmatprep.subr.bf16.mxu0 %v4409_v27  ;;  %v4679_v27 = vld [vmem:[#allocation2 + $0x10] sm:$0xff] }
 0x473   : > { %4105 = vmatmul.mubr.bf16.vlgmr.msra.gmra.mrb[16].mxu1 %v1523_v33 }
 0x474   : > { %4109 = vmatpush3.bf16.xpose.msra.mxu1 %v1529_v10  ;;  %4110 = vmatprep.mubr.msk.bf16.mxu1 %vm4968_vm0, %v4967_v12 }
 0x475   : > { %4114 = vmatprep.subr.bf16.mxu1 %v4967_v12 }
 0x47b   : > { %4111 = vmatmul.mubr.bf16.vlgmr.msra.gmra.mrb[20].mxu1 %v1525_v49 }
 0x47c   : > { %4115 = vmatpush3.bf16.msra.mxu1 %v1531_v59  ;;  %4116 = vmatprep.mubr.msk.bf16.mxu1 %vm4968_vm0, %v4967_v12 }
 0x47d   : > { %4120 = vmatprep.subr.bf16.mxu1 %v4967_v12 }
 0x535   : > { %v5601_v30 = vpop.f32.mrb[8].mxu1 }
 0x536   : > { %v4094_v31 = vpop.f32.mrb[9].mxu1 }
 0x537   : > { %v5603_v33 = vpop.f32.mrb[10].mxu1  ;;  %v4407_v31 = vld [vmem:[%s5314_s11 + $0x60] ss:$8 sps:$4 sm:$0xff]  }
 0x538   : > { %v1967_v61 = vpack.c.bf16 %v5603_v33, %v5601_v30  ;;  %v4095_v62 = vpop.f32.mrb[11].mxu1  ;;  %2188 = vmatpush1.bf16.msra.mxu0 %v4407_v31  ;;  %v2012_v30 = vrot.slane %v2003_v13, %v5477_v18  ;;  %v4469_v13 = vld [vmem:[%s5318_s22 + $0xa4] ss:$16 sps:$4 sm:$0xff]  }
 0x539   : > { %v4412_v62 = vld [vmem:[%s5314_s11 + $0x74] ss:$8 sps:$4 sm:$0xff]  }
 0x53a   : > { %2189 = vmatprep.subr.bf16.mxu0 %v4412_v62  ;;  %v4680_v62 = vld [vmem:[#allocation2 + $0x18] sm:$0xff] }
 0x53d   : > { %v5607_v0 = vpop.f32.mrb[12].mxu1 }
 0x53e   : > { %v4100_v7 = vpop.f32.mrb[13].mxu1 }
 0x53f   : > { %v5609_v44 = vpop.f32.mrb[14].mxu1  ;;  %v4410_v7 = vld [vmem:[%s5314_s11 + $0x70] ss:$8 sps:$4 sm:$0xff]  }
 0x540   : > { %v1969_v47 = vpack.c.bf16 %v5609_v44, %v5607_v0  ;;  %v4101_v49 = vpop.f32.mrb[15].mxu1  ;;  %2190 = vmatpush1.bf16.msra.mxu0 %v4410_v7  ;;  %v4678_v44 = vld [vmem:[#allocation2 + $0x8] sm:$0xff] }
 0x541   : > { %v4415_v49 = vld [vmem:[%s5314_s11 + $0x84] ss:$8 sps:$4 sm:$0xff]  }
 0x542   : > { %2191 = vmatprep.subr.bf16.mxu0 %v4415_v49 }
 0x546   : > { %v1785_v8 = vpop.f32.mrb[16].mxu1 }
 0x547   : > { %v4106_v10 = vpop.f32.mrb[17].mxu1  ;;  %v1833_v26 = vsel %vm1616_vm1, %v1785_v8, -inf }
 0x548   : > { %1834 = vmax.xlane.f32.xlu0 %v1833_v26  ;;  %v1788_v28 = vpop.f32.mrb[18].mxu1  ;;  %v4418_v10 = vld [vmem:[%s5314_s11 + $0x94] ss:$8 sps:$4 sm:$0xff]   ;;  %v4416_v26 = vld [vmem:[%s5314_s11 + $0x90] ss:$8 sps:$4 sm:$0xff]  }
 0x549   : > { %v4107_v29 = vpop.f32.mrb[19].mxu1  ;;  %v1836_v32 = vsel %vm1616_vm1, %v1788_v28, -inf }
 0x54a   : > { %1837 = vmax.xlane.f32.xlu1 %v1836_v32  ;;  %v4419_v29 = vld [vmem:[%s5314_s11 + $0xa0] ss:$8 sps:$4 sm:$0xff]   ;;  %v4424_v32 = vld [vmem:[%s5314_s11 + $0xb4] ss:$8 sps:$4 sm:$0xff]  }
 0x54e   : > { %v1826_v34 = vpop.f32.mrb[20].mxu1 }
 0x54f   : > { %v4112_v35 = vpop.f32.mrb[21].mxu1  ;;  %v1839_v36 = vsel %vm1616_vm1, %v1826_v34, -inf }
 0x550   : > { %1840 = vmax.xlane.f32.xlu0 %v1839_v36  ;;  %v1829_v37 = vpop.f32.mrb[22].mxu1  ;;  %v4427_v35 = vld [vmem:[%s5314_s11 + $0xc4] ss:$8 sps:$4 sm:$0xff]   ;;  %v4425_v36 = vld [vmem:[%s5314_s11 + $0xc0] ss:$8 sps:$4 sm:$0xff]  }
 0x551   : > { %v4113_v38 = vpop.f32.mrb[23].mxu1  ;;  %v1842_v39 = vsel %vm1616_vm1, %v1829_v37, -inf }
 0x552   : > { %1843 = vmax.xlane.f32.xlu1 %v1842_v39  ;;  %v4428_v38 = vld [vmem:[%s5314_s11 + $0xd0] ss:$8 sps:$4 sm:$0xff]   ;;  %v4433_v39 = vld [vmem:[%s5314_s11 + $0xe4] ss:$8 sps:$4 sm:$0xff]  }
 0x5d5   : > { %v1835_v40 = vpop.xlane.xlu0 %1834 }
 0x5d6   : > { %v1845_v42 = vsub.f32 %v1785_v8, %v1835_v40  ;;  %v4413_v8 = vld [vmem:[%s5314_s11 + $0x80] ss:$8 sps:$4 sm:$0xff]  }
 0x5d7   : > { %v1838_v45 = vpop.xlane.xlu1 %1837  ;;  %2192 = vmatpush1.bf16.msra.mxu0 %v4413_v8  ;;  %v4431_v40 = vld [vmem:[%s5314_s11 + $0xe0] ss:$8 sps:$4 sm:$0xff]  }
 0x5d8   : > { %v1849_v46 = vmul.f32 1.442695, %v1845_v42  ;;  %v1846_v48 = vsub.f32 %v1788_v28, %v1838_v45  ;;  %2193 = vmatprep.subr.bf16.mxu0 %v4418_v10  ;;  %v4421_v28 = vld [vmem:[%s5314_s11 + $0xa4] ss:$8 sps:$4 sm:$0xff]  }
 0x5da   : > { %4645 = vpow2.f32 %v1849_v46  ;;  %v1851_v53 = vmul.f32 1.442695, %v1846_v48 }
 0x5db   : > { %2194 = vmatpush1.bf16.msra.mxu0 %v4416_v26 }
 0x5dc   : > { %4647 = vpow2.f32 %v1851_v53  ;;  %2195 = vmatprep.subr.bf16.mxu0 %v4421_v28 }
 0x5dd   : > { %v1841_v54 = vpop.xlane.xlu0 %1840 }
 0x5de   : > { %v1847_v55 = vsub.f32 %v1826_v34, %v1841_v54  ;;  %v4422_v34 = vld [vmem:[%s5314_s11 + $0xb0] ss:$8 sps:$4 sm:$0xff]  }
 0x5df   : > { %v1844_v56 = vpop.xlane.xlu1 %1843  ;;  %2196 = vmatpush1.bf16.msra.mxu0 %v4419_v29 }
 0x5e0   : > { %v1853_v57 = vmul.f32 1.442695, %v1847_v55  ;;  %v1848_v58 = vsub.f32 %v1829_v37, %v1844_v56  ;;  %2197 = vmatprep.subr.bf16.mxu0 %v4424_v32  ;;  %v4430_v37 = vld [vmem:[%s5314_s11 + $0xd4] ss:$8 sps:$4 sm:$0xff]  }
 0x5e2   : > { %4649 = vpow2.f32 %v1853_v57  ;;  %v1855_v59 = vmul.f32 1.442695, %v1848_v58 }
 0x5e3   : > { %2198 = vmatpush1.bf16.msra.mxu0 %v4422_v34  ;;  %v4681_v34 = vld [vmem:[#allocation2 + $0x20] sm:$0xff] }
 0x5e4   : > { %v5617_v60 = vpop.eup %4645  ;;  %4651 = vpow2.f32 %v1855_v59  ;;  %2199 = vmatprep.subr.bf16.mxu0 %v4427_v35 }
 0x5e5   : > { %v1857_v63 = vsel %vm1616_vm1, %v5617_v60, 0.0 }
 0x5e6   : > { %v5621_v1 = vpop.eup %4647  ;;  %1858 = vadd.xlane.f32.xlu0 %v1857_v63 }
 0x5e7   : > { %v1860_v2 = vsel %vm1616_vm1, %v5621_v1, 0.0  ;;  %2200 = vmatpush1.bf16.msra.mxu0 %v4425_v36 }
 0x5e8   : > { %1861 = vadd.xlane.f32.xlu1 %v1860_v2  ;;  %2201 = vmatprep.subr.bf16.mxu0 %v4430_v37 }
 0x5eb   : > { %2202 = vmatpush1.bf16.msra.mxu0 %v4428_v38  ;;  %v4682_v38 = vld [vmem:[#allocation2 + $0x28] sm:$0xff] }
 0x5ec   : > { %v5625_v3 = vpop.eup %4649  ;;  %2203 = vmatprep.subr.bf16.mxu0 %v4433_v39 }
 0x5ed   : > { %v1863_v5 = vsel %vm1616_vm1, %v5625_v3, 0.0 }
 0x5ee   : > { %v5629_v6 = vpop.eup %4651  ;;  %1864 = vadd.xlane.f32.xlu0 %v1863_v5 }
 0x5ef   : > { %v1866_v43 = vsel %vm1616_vm1, %v5629_v6, 0.0  ;;  %2204 = vmatpush1.bf16.msra.mxu0 %v4431_v40 }
 0x5f0   : > { %1867 = vadd.xlane.f32.xlu1 %v1866_v43 }
 0x673   : > { %v1859_v42 = vpop.xlane.xlu0 %1858 }
 0x674   : > { %4653 = vrcp.f32 %v1859_v42  ;;  %v4683_v42 = vld [vmem:[#allocation2 + $0x30] sm:$0xff] }
 0x675   : > { %v1862_v45 = vpop.xlane.xlu1 %1861 }
 0x676   : > { %4655 = vrcp.f32 %v1862_v45 }
 0x67b   : > { %v1865_v46 = vpop.xlane.xlu0 %1864 }
 0x67c   : > { %4657 = vrcp.f32 %v1865_v46  ;;  %v4684_v46 = vld [vmem:[#allocation2 + $0x38] sm:$0xff] }
 0x67d   : > { %v1868_v48 = vpop.xlane.xlu1 %1867 }
 0x67e   : > { %v4654_v53 = vpop.eup %4653  ;;  %4659 = vrcp.f32 %v1868_v48 }
 0x67f   : > { %v1873_v55 = vmul.f32 %v4654_v53, %v5617_v60  ;;  %v4436_v60 = vld [vmem:[%s5314_s11 + $0xf4] ss:$8 sps:$4 sm:$0xff]  }
 0x680   : > { %v4656_v54 = vpop.eup %4655  ;;  %2205 = vmatprep.subr.bf16.mxu0 %v4436_v60  ;;  %v4451_v60 = vld [vmem:[%s5318_s22 + $0x44] ss:$16 sps:$4 sm:$0xff]  }
 0x681   : > { %v1874_v56 = vmul.f32 %v4656_v54, %v5621_v1  ;;  %v4434_v1 = vld [vmem:[%s5314_s11 + $0xf0] ss:$8 sps:$4 sm:$0xff]  }
 0x682   : > { %2206 = vmatpush1.bf16.msra.mxu0 %v4434_v1  ;;  %v4454_v1 = vld [vmem:[%s5318_s22 + $0x4c] ss:$16 sps:$4 sm:$0xff]  }
 0x683   : > { %v1877_v57 = vpack.c.bf16 %v1874_v56, %v1873_v55  ;;  %v4437_v55 = vld [vmem:[%s5318_s22] ss:$16 sps:$4 sm:$0xff]   ;;  %v4439_v56 = vld [vmem:[%s5318_s22 + $0x4] ss:$16 sps:$4 sm:$0xff]  }
 0x685   : > { %4117 = vmatmul.mubr.msk.bf16.vlgmr.msra.gmra.mrb[24].mxu1 %vm1616_vm1, %v1877_v57  ;;  %v4440_v57 = vld [vmem:[%s5318_s22 + $0x8] ss:$16 sps:$4 sm:$0xff]  }
 0x686   : > { %v4658_v58 = vpop.eup %4657  ;;  %4121 = vmatpush3.bf16.msra.mxu1 %v1533_v41  ;;  %4122 = vmatprep.mubr.msk.bf16.mxu1 %vm4968_vm0, %v4967_v12 }
 0x687   : > { %v1875_v63 = vmul.f32 %v4658_v58, %v5625_v3  ;;  %v4442_v58 = vld [vmem:[%s5318_s22 + $0xc] ss:$16 sps:$4 sm:$0xff]   ;;  %2751 = vmatprep.subr.bf16.mxu1 %v4439_v56 }
 0x688   : > { %v4660_v59 = vpop.eup %4659  ;;  %2804 = vmatprep.subr.bf16.mxu0 %v4442_v58 }
 0x689   : > { %v1876_v2 = vmul.f32 %v4660_v59, %v5629_v6  ;;  %v4445_v59 = vld [vmem:[%s5318_s22 + $0x24] ss:$16 sps:$4 sm:$0xff]  }
 0x68b   : > { %v1878_v5 = vpack.c.bf16 %v1876_v2, %v1875_v63  ;;  %v4448_v63 = vld [vmem:[%s5318_s22 + $0x2c] ss:$16 sps:$4 sm:$0xff]   ;;  %v4443_v2 = vld [vmem:[%s5318_s22 + $0x20] ss:$16 sps:$4 sm:$0xff]  }
 0x68d   : > { %4123 = vmatmul.mubr.msk.bf16.vlgmr.msra.gmra.mrb[28].mxu1 %vm1616_vm1, %v1878_v5  ;;  %v4446_v5 = vld [vmem:[%s5318_s22 + $0x28] ss:$16 sps:$4 sm:$0xff]  }
 0x68e   : > { %2752 = vmatpush1.bf16.msra.mxu1 %v4437_v55 }
 0x68f   : > { %2753 = vmatprep.subr.bf16.mxu1 %v4445_v59 }
 0x692   : > { %2754 = vmatpush1.bf16.msra.mxu1 %v4443_v2 }
 0x693   : > { %2755 = vmatprep.subr.bf16.mxu1 %v4451_v60 }
 0x758   : > { %v1916_v43 = vpop.f32.mrb[24].mxu1 }
 0x759   : > { %v4118_v50 = vpop.f32.mrb[25].mxu1 }
 0x75a   : > { %v1919_v4 = vpop.f32.mrb[26].mxu1  ;;  %v4452_v50 = vld [vmem:[%s5318_s22 + $0x48] ss:$16 sps:$4 sm:$0xff]  }
 0x75b   : > { %v1968_v17 = vpack.c.bf16 %v1919_v4, %v1916_v43  ;;  %v4119_v41 = vpop.f32.mrb[27].mxu1  ;;  %v4449_v43 = vld [vmem:[%s5318_s22 + $0x40] ss:$16 sps:$4 sm:$0xff]   ;;  %v4457_v4 = vld [vmem:[%s5318_s22 + $0x64] ss:$16 sps:$4 sm:$0xff]  }
 0x75c   : > { %2756 = vmatpush1.bf16.msra.mxu1 %v4449_v43  ;;  %v4455_v41 = vld [vmem:[%s5318_s22 + $0x60] ss:$16 sps:$4 sm:$0xff]   ;;  %v4502_v43 = vld [vmem:[%s5318_s22 + $0x14c] ss:$16 sps:$4 sm:$0xff]  }
 0x75d   : > { %2207 = vmatprep.mubr.bf16.mxu0 %v1968_v17  ;;  %v4460_v17 = vld [vmem:[%s5318_s22 + $0x6c] ss:$16 sps:$4 sm:$0xff]   ;;  %2757 = vmatprep.subr.bf16.mxu1 %v4457_v4  ;;  %v4500_v4 = vld [vmem:[%s5318_s22 + $0x148] ss:$16 sps:$4 sm:$0xff]  }
 0x75e   : > { %2208 = vmatmul.mubr.bf16.vlgmr.msra.gmra.mrb[24].mxu0 %v1967_v61 }
 0x75f   : > { %2805 = vmatpush1.bf16.msra.mxu0 %v4440_v57 }
 0x760   : > { %v1960_v12 = vpop.f32.mrb[28].mxu1  ;;  %2806 = vmatprep.subr.bf16.mxu0 %v4448_v63  ;;  %2758 = vmatpush1.bf16.msra.mxu1 %v4455_v41  ;;  %v4508_v41 = vld [vmem:[%s5318_s22 + $0x16c] ss:$16 sps:$4 sm:$0xff]  }
 0x761   : > { %v4124_v3 = vpop.f32.mrb[29].mxu1 }
 0x762   : > { %v1963_v6 = vpop.f32.mrb[30].mxu1  ;;  %v4463_v3 = vld [vmem:[%s5318_s22 + $0x84] ss:$16 sps:$4 sm:$0xff]  }
 0x763   : > { %v1970_v9 = vpack.c.bf16 %v1963_v6, %v1960_v12  ;;  %v4125_v11 = vpop.f32.mrb[31].mxu1  ;;  %2807 = vmatpush1.bf16.msra.mxu0 %v4446_v5  ;;  %v4458_v12 = vld [vmem:[%s5318_s22 + $0x68] ss:$16 sps:$4 sm:$0xff]   ;;  %v4466_v6 = vld [vmem:[%s5318_s22 + $0x8c] ss:$16 sps:$4 sm:$0xff]   ;;  %2759 = vmatprep.subr.bf16.mxu1 %v4463_v3 }
 0x764   : > { %2808 = vmatprep.subr.bf16.mxu0 %v4454_v1  ;;  %v4464_v11 = vld [vmem:[%s5318_s22 + $0x88] ss:$16 sps:$4 sm:$0xff]   ;;  %v4499_v1 = vld [vmem:[%s5318_s22 + $0x144] ss:$16 sps:$4 sm:$0xff]  }
 0x765   : > { %2217 = vmatprep.mubr.bf16.mxu0 %v1970_v9  ;;  %v4461_v9 = vld [vmem:[%s5318_s22 + $0x80] ss:$16 sps:$4 sm:$0xff]   ;;  %v4506_v3 = vld [vmem:[%s5318_s22 + $0x168] ss:$16 sps:$4 sm:$0xff]  }
 0x766   : > { %2218 = vmatmul.mubr.bf16.gmra.mrb[28].mxu0 %v1969_v47  ;;  %2760 = vmatpush1.bf16.msra.mxu1 %v4461_v9  ;;  %v4514_v9 = vld [vmem:[%s5318_s22 + $0x18c] ss:$16 sps:$4 sm:$0xff]  }
 0x767   : > { %2809 = vmatpush1.bf16.msra.mxu0 %v4452_v50  ;;  %2761 = vmatprep.subr.bf16.mxu1 %v4469_v13  ;;  %v4497_v50 = vld [vmem:[%s5318_s22 + $0x140] ss:$16 sps:$4 sm:$0xff]   ;;  %v4512_v13 = vld [vmem:[%s5318_s22 + $0x188] ss:$16 sps:$4 sm:$0xff]  }
 0x768   : > { %2810 = vmatprep.subr.bf16.mxu0 %v4460_v17  ;;  %v4505_v17 = vld [vmem:[%s5318_s22 + $0x164] ss:$16 sps:$4 sm:$0xff]  }
 0x76b   : > { %2811 = vmatpush1.bf16.msra.mxu0 %v4458_v12  ;;  %v4503_v12 = vld [vmem:[%s5318_s22 + $0x160] ss:$16 sps:$4 sm:$0xff]  }
 0x76c   : > { %2812 = vmatprep.subr.bf16.mxu0 %v4466_v6  ;;  %v4511_v6 = vld [vmem:[%s5318_s22 + $0x184] ss:$16 sps:$4 sm:$0xff]  }
 0x76f   : > { %2813 = vmatpush1.bf16.msra.mxu0 %v4464_v11  ;;  %v4509_v11 = vld [vmem:[%s5318_s22 + $0x180] ss:$16 sps:$4 sm:$0xff]  }
 0x831   : > { %v2209_v33 = vpop.f32.mrb[24].mxu0 }
 0x832   : > { %v2210_v61 = vadd.f32 %v2209_v33, %v2008_v15  ;;  %v2211_v19 = vpop.f32.mrb[25].mxu0  ;;  %v4470_v33 = vld [vmem:[%s5318_s22 + $0xa8] ss:$16 sps:$4 sm:$0xff]  }
 0x833   : > { %v2212_v20 = vadd.f32 %v2211_v19, %v2012_v30  ;;  %v2213_v21 = vpop.f32.mrb[26].mxu0  ;;  %v4478_v19 = vld [vmem:[%s5318_s22 + $0xcc] ss:$16 sps:$4 sm:$0xff]  }
 0x834   : > { %v5689_v23 = vadd.f32 %v4677_v22, %v2210_v61  ;;  %v2214_v24 = vadd.f32 %v2213_v21, %v2008_v15  ;;  %v2215_v0 = vpop.f32.mrb[27].mxu0  ;;  %v4475_v61 = vld [vmem:[%s5318_s22 + $0xc4] ss:$16 sps:$4 sm:$0xff]   ;;  %v4476_v21 = vld [vmem:[%s5318_s22 + $0xc8] ss:$16 sps:$4 sm:$0xff]  }
 0x835   : > { %v5691_v47 = vadd.f32 %v4678_v44, %v2212_v20  ;;  %v2216_v25 = vadd.f32 %v2215_v0, %v2012_v30  ;;  %v4473_v20 = vld [vmem:[%s5318_s22 + $0xc0] ss:$16 sps:$4 sm:$0xff]   ;;  %v4481_v22 = vld [vmem:[%s5318_s22 + $0xe4] ss:$16 sps:$4 sm:$0xff]   ;;  %v4482_v44 = vld [vmem:[%s5318_s22 + $0xe8] ss:$16 sps:$4 sm:$0xff]  }
 0x836   : > { %v5693_v31 = vadd.f32 %v4679_v27, %v2214_v24  ;;  %v4484_v24 = vld [vmem:[%s5318_s22 + $0xec] ss:$16 sps:$4 sm:$0xff]   ;;  %v4479_v0 = vld [vmem:[%s5318_s22 + $0xe0] ss:$16 sps:$4 sm:$0xff]  }
 0x837   : > { %v5695_v7 = vadd.f32 %v4680_v62, %v2216_v25  ;;  %v2238_v49 = vadd.f32 %v5691_v47, %v5689_v23  ;;  %v4487_v25 = vld [vmem:[%s5318_s22 + $0x104] ss:$16 sps:$4 sm:$0xff]   ;;  %v4490_v27 = vld [vmem:[%s5318_s22 + $0x10c] ss:$16 sps:$4 sm:$0xff]   ;;  %v4485_v62 = vld [vmem:[%s5318_s22 + $0x100] ss:$16 sps:$4 sm:$0xff]  }
 0x839   : > { %2239 = vadd.xlane.f32.xlu0 %v2238_v49  ;;  %v2219_v8 = vpop.f32.mrb[28].mxu0  ;;  %v2241_v10 = vadd.f32 %v5695_v7, %v5693_v31  ;;  %v4488_v49 = vld [vmem:[%s5318_s22 + $0x108] ss:$16 sps:$4 sm:$0xff]  }
 0x83a   : > { %v2220_v26 = vadd.f32 %v2219_v8, %v2008_v15  ;;  %v2221_v28 = vpop.f32.mrb[29].mxu0  ;;  %v4493_v8 = vld [vmem:[%s5318_s22 + $0x124] ss:$16 sps:$4 sm:$0xff]  }
 0x83b   : > { %v2222_v29 = vadd.f32 %v2221_v28, %v2012_v30  ;;  %2242 = vadd.xlane.f32.xlu1 %v2241_v10  ;;  %v2223_v32 = vpop.f32.mrb[30].mxu0  ;;  %v4496_v10 = vld [vmem:[%s5318_s22 + $0x12c] ss:$16 sps:$4 sm:$0xff]   ;;  %v4494_v28 = vld [vmem:[%s5318_s22 + $0x128] ss:$16 sps:$4 sm:$0xff]  }
 0x83c   : > { %v5701_v35 = vadd.f32 %v4681_v34, %v2220_v26  ;;  %v2224_v36 = vadd.f32 %v2223_v32, %v2008_v15  ;;  %v2225_v37 = vpop.f32.mrb[31].mxu0  ;;  %v4472_v15 = vld [vmem:[%s5318_s22 + $0xac] ss:$16 sps:$4 sm:$0xff]   ;;  %v4491_v26 = vld [vmem:[%s5318_s22 + $0x120] ss:$16 sps:$4 sm:$0xff]  }
 0x83d   : > { %v5703_v39 = vadd.f32 %v4682_v38, %v2222_v29  ;;  %v2226_v40 = vadd.f32 %v2225_v37, %v2012_v30  ;;  %v4467_v30 = vld [vmem:[%s5318_s22 + $0xa0] ss:$16 sps:$4 sm:$0xff]   ;;  %2814 = vmatprep.subr.bf16.mxu0 %v4472_v15  ;;  %v4517_v15 = vld [vmem:[%s5318_s22 + $0x1a4] ss:$16 sps:$4 sm:$0xff]  }
 0x83e   : > { %v5705_v45 = vadd.f32 %v4683_v42, %v2224_v36  ;;  %2762 = vmatpush1.bf16.msra.mxu1 %v4467_v30  ;;  %2815 = vmatpush1.bf16.msra.mxu0 %v4470_v33  ;;  %v4520_v30 = vld [vmem:[%s5318_s22 + $0x1ac] ss:$16 sps:$4 sm:$0xff]   ;;  %v4515_v33 = vld [vmem:[%s5318_s22 + $0x1a0] ss:$16 sps:$4 sm:$0xff]  }
 0x83f   : > { %v5707_v48 = vadd.f32 %v4684_v46, %v2226_v40  ;;  %v2244_v53 = vadd.f32 %v5703_v39, %v5701_v35  ;;  %2763 = vmatprep.subr.bf16.mxu1 %v4475_v61  ;;  %2816 = vmatprep.subr.bf16.mxu0 %v4478_v19  ;;  %v4518_v61 = vld [vmem:[%s5318_s22 + $0x1a8] ss:$16 sps:$4 sm:$0xff]   ;;  %v4521_v19 = vld [vmem:[%s5318_s22 + $0x1c0] ss:$16 sps:$4 sm:$0xff]  }
 0x841   : > { %2245 = vadd.xlane.f32.xlu0 %v2244_v53  ;;  %v2247_v54 = vadd.f32 %v5707_v48, %v5705_v45 }
 0x842   : > { %2764 = vmatpush1.bf16.msra.mxu1 %v4473_v20  ;;  %2817 = vmatpush1.bf16.msra.mxu0 %v4476_v21  ;;  %v4523_v20 = vld [vmem:[%s5318_s22 + $0x1c4] ss:$16 sps:$4 sm:$0xff]   ;;  %v4524_v21 = vld [vmem:[%s5318_s22 + $0x1c8] ss:$16 sps:$4 sm:$0xff]  }
 0x843   : > { %2248 = vadd.xlane.f32.xlu1 %v2247_v54  ;;  %2765 = vmatprep.subr.bf16.mxu1 %v4481_v22  ;;  %v4526_v22 = vld [vmem:[%s5318_s22 + $0x1cc] ss:$16 sps:$4 sm:$0xff]  }
 0x844   : > { %2818 = vmatprep.subr.bf16.mxu0 %v4484_v24  ;;  %v4529_v24 = vld [vmem:[%s5318_s22 + $0x1e4] ss:$16 sps:$4 sm:$0xff]  }
 0x846   : > { %2766 = vmatpush1.bf16.msra.mxu1 %v4479_v0  ;;  %2819 = vmatpush1.bf16.msra.mxu0 %v4482_v44  ;;  %v4532_v0 = vld [vmem:[%s5318_s22 + $0x1ec] ss:$16 sps:$4 sm:$0xff]   ;;  %v4527_v44 = vld [vmem:[%s5318_s22 + $0x1e0] ss:$16 sps:$4 sm:$0xff]  }
 0x847   : > { %2767 = vmatprep.subr.bf16.mxu1 %v4487_v25  ;;  %2820 = vmatprep.subr.bf16.mxu0 %v4490_v27  ;;  %v4530_v25 = vld [vmem:[%s5318_s22 + $0x1e8] ss:$16 sps:$4 sm:$0xff]   ;;  %v4535_v27 = vld [vmem:[%s5378_s4 + $0x4] ss:$8 sps:$4 sm:$0xff]  }
 0x84a   : > { %2768 = vmatpush1.bf16.msra.mxu1 %v4485_v62  ;;  %2821 = vmatpush1.bf16.msra.mxu0 %v4488_v49 }
 0x84b   : > { %2769 = vmatprep.subr.bf16.mxu1 %v4493_v8  ;;  %2822 = vmatprep.subr.bf16.mxu0 %v4496_v10 }
 0x84e   : > { %2770 = vmatpush1.bf16.msra.mxu1 %v4491_v26  ;;  %2823 = vmatpush1.bf16.msra.mxu0 %v4494_v28 }
 0x84f   : > { %2771 = vmatprep.subr.bf16.mxu1 %v4499_v1  ;;  %2824 = vmatprep.subr.bf16.mxu0 %v4502_v43 }
 0x852   : > { %2772 = vmatpush1.bf16.msra.mxu1 %v4497_v50  ;;  %2825 = vmatpush1.bf16.msra.mxu0 %v4500_v4 }
 0x853   : > { %2773 = vmatprep.subr.bf16.mxu1 %v4505_v17  ;;  %2826 = vmatprep.subr.bf16.mxu0 %v4508_v41 }
 0x856   : > { %2774 = vmatpush1.bf16.msra.mxu1 %v4503_v12  ;;  %2827 = vmatpush1.bf16.msra.mxu0 %v4506_v3  ;;  %v4533_v3 = vld [vmem:[%s5378_s4] ss:$8 sps:$4 sm:$0xff]  }
 0x857   : > { %2775 = vmatprep.subr.bf16.mxu1 %v4511_v6  ;;  %2828 = vmatprep.subr.bf16.mxu0 %v4514_v9  ;;  %v4538_v9 = vld [vmem:[%s5378_s4 + $0x14] ss:$8 sps:$4 sm:$0xff]  }
 0x85a   : > { %2776 = vmatpush1.bf16.msra.mxu1 %v4509_v11  ;;  %2829 = vmatpush1.bf16.msra.mxu0 %v4512_v13 }
 0x85b   : > { %2777 = vmatprep.subr.bf16.mxu1 %v4517_v15  ;;  %2830 = vmatprep.subr.bf16.mxu0 %v4520_v30 }
 0x85e   : > { %2778 = vmatpush1.bf16.msra.mxu1 %v4515_v33  ;;  %2831 = vmatpush1.bf16.msra.mxu0 %v4518_v61  ;;  %v4541_v61 = vld [vmem:[%s5378_s4 + $0x24] ss:$8 sps:$4 sm:$0xff]  }
 0x85f   : > { %2779 = vmatprep.subr.bf16.mxu1 %v4523_v20  ;;  %2832 = vmatprep.subr.bf16.mxu0 %v4526_v22 }
 0x862   : > { %2780 = vmatpush1.bf16.msra.mxu1 %v4521_v19  ;;  %2833 = vmatpush1.bf16.msra.mxu0 %v4524_v21 }
 0x863   : > { %2781 = vmatprep.subr.bf16.mxu1 %v4529_v24  ;;  %2834 = vmatprep.subr.bf16.mxu0 %v4532_v0  ;;  %v4539_v24 = vld [vmem:[%s5378_s4 + $0x20] ss:$8 sps:$4 sm:$0xff]   ;;  %v4544_v0 = vld [vmem:[%s5378_s4 + $0x34] ss:$8 sps:$4 sm:$0xff]  }
 0x866   : > { %2782 = vmatpush1.bf16.msra.mxu1 %v4527_v44  ;;  %2835 = vmatpush1.bf16.msra.mxu0 %v4530_v25  ;;  %v4542_v44 = vld [vmem:[%s5378_s4 + $0x30] ss:$8 sps:$4 sm:$0xff]   ;;  %v4547_v25 = vld [vmem:[%s5378_s4 + $0x44] ss:$8 sps:$4 sm:$0xff]  }
 0x867   : > { %3277 = vmatprep.subr.bf16.mxu1 %v4535_v27  ;;  %v4545_v27 = vld [vmem:[%s5378_s4 + $0x40] ss:$8 sps:$4 sm:$0xff]  }
 0x8c6   : > { %v2240_v29 = vpop.xlane.xlu0 %2239 }
 0x8c7   : > { %v2251_v32 = vmul.f32 0.00390625, %v2240_v29 }
 0x8c8   : > { %v2243_v34 = vpop.xlane.xlu1 %2242 }
 0x8c9   : > { %v5754_v36 = vsub.f32 %v5689_v23, %v2251_v32  ;;  %v5757_v37 = vsub.f32 %v5691_v47, %v2251_v32  ;;  %v2252_v38 = vmul.f32 0.00390625, %v2243_v34 }
 0x8cb   : > { %v5760_v40 = vsub.f32 %v5693_v31, %v2252_v38  ;;  %v5763_v42 = vsub.f32 %v5695_v7, %v2252_v38  ;;  %v2263_v46 = vmul.f32 %v5754_v36, %v5754_v36  ;;  %v2264_v53 = vmul.f32 %v5757_v37, %v5757_v37 }
 0x8cd   : > { %v2271_v54 = vadd.f32 %v2264_v53, %v2263_v46  ;;  %v2265_v23 = vmul.f32 %v5760_v40, %v5760_v40  ;;  %v2266_v47 = vmul.f32 %v5763_v42, %v5763_v42  ;;  %v2236_v53 = vld [vmem:[%s6088_s16] sm:$0x3] }
 0x8ce   : > { %v2246_v55 = vpop.xlane.xlu0 %2245 }
 0x8cf   : > { %v2253_v56 = vmul.f32 0.00390625, %v2246_v55  ;;  %2272 = vadd.xlane.f32.xlu0 %v2271_v54  ;;  %v2274_v31 = vadd.f32 %v2266_v47, %v2265_v23  ;;  %v2237_v23 = vld [vmem:[%s6089_s13] sm:$0x3]  ;;  %v2307_v47 = vrot.slane %v2236_v53, %v5471_v16  ;;  %v2311_v55 = vrot.slane %v2236_v53, %v5477_v18  ;;  %v4563_v53 = vld [vmem:[%s5378_s4 + $0xa0] ss:$8 sps:$4 sm:$0xff]  }
 0x8d0   : > { %v2249_v7 = vpop.xlane.xlu1 %2248 }
 0x8d1   : > { %v5774_v57 = vsub.f32 %v5701_v35, %v2253_v56  ;;  %v5777_v58 = vsub.f32 %v5703_v39, %v2253_v56  ;;  %v2254_v59 = vmul.f32 0.00390625, %v2249_v7  ;;  %2275 = vadd.xlane.f32.xlu1 %v2274_v31 }
 0x8d3   : > { %v5780_v63 = vsub.f32 %v5705_v45, %v2254_v59  ;;  %v5783_v2 = vsub.f32 %v5707_v48, %v2254_v59  ;;  %v2267_v5 = vmul.f32 %v5774_v57, %v5774_v57  ;;  %v2268_v35 = vmul.f32 %v5777_v58, %v5777_v58 }
 0x8d5   : > { %v2277_v60 = vadd.f32 %v2268_v35, %v2267_v5  ;;  %v2269_v39 = vmul.f32 %v5780_v63, %v5780_v63  ;;  %v2270_v45 = vmul.f32 %v5783_v2, %v5783_v2  ;;  %v2326_v5 = vrot.slane %v2237_v23, %v5471_v16 }
 0x8d6   : > { %v2330_v35 = vrot.slane %v2237_v23, %v5477_v18  ;;  %v4566_v23 = vld [vmem:[%s5378_s4 + $0xb0] ss:$8 sps:$4 sm:$0xff]  }
 0x8d7   : > { %2278 = vadd.xlane.f32.xlu0 %v2277_v60  ;;  %v2280_v48 = vadd.f32 %v2270_v45, %v2269_v39 }
 0x8d9   : > { %2281 = vadd.xlane.f32.xlu1 %v2280_v48 }
 0x95c   : > { %v2273_v62 = vpop.xlane.xlu0 %2272 }
 0x95d   : > { %v2283_v49 = vmul.f32 0.00390625, %v2273_v62  ;;  %v4550_v62 = vld [vmem:[%s5378_s4 + $0x54] ss:$8 sps:$4 sm:$0xff]  }
 0x95e   : > { %v2276_v8 = vpop.xlane.xlu1 %2275 }
 0x95f   : > { %v2287_v10 = vadd.f32 1e-05, %v2283_v49  ;;  %v2284_v26 = vmul.f32 0.00390625, %v2276_v8  ;;  %v4548_v49 = vld [vmem:[%s5378_s4 + $0x50] ss:$8 sps:$4 sm:$0xff]  }
 0x960   : > { %v4553_v8 = vld [vmem:[%s5378_s4 + $0x64] ss:$8 sps:$4 sm:$0xff]  }
 0x961   : > { %4661 = vrsqrt.f32 %v2287_v10  ;;  %v2288_v28 = vadd.f32 1e-05, %v2284_v26  ;;  %v4551_v10 = vld [vmem:[%s5378_s4 + $0x60] ss:$8 sps:$4 sm:$0xff]   ;;  %v4556_v26 = vld [vmem:[%s5378_s4 + $0x74] ss:$8 sps:$4 sm:$0xff]  }
 0x963   : > { %4663 = vrsqrt.f32 %v2288_v28  ;;  %v4554_v28 = vld [vmem:[%s5378_s4 + $0x70] ss:$8 sps:$4 sm:$0xff]  }
 0x964   : > { %v2279_v29 = vpop.xlane.xlu0 %2278 }
 0x965   : > { %v2285_v32 = vmul.f32 0.00390625, %v2279_v29  ;;  %v4559_v29 = vld [vmem:[%s5378_s4 + $0x84] ss:$8 sps:$4 sm:$0xff]  }
 0x966   : > { %v2282_v34 = vpop.xlane.xlu1 %2281 }
 0x967   : > { %v2289_v38 = vadd.f32 1e-05, %v2285_v32  ;;  %v2286_v46 = vmul.f32 0.00390625, %v2282_v34  ;;  %v4557_v32 = vld [vmem:[%s5378_s4 + $0x80] ss:$8 sps:$4 sm:$0xff]  }
 0x968   : > { %v4562_v34 = vld [vmem:[%s5378_s4 + $0x94] ss:$8 sps:$4 sm:$0xff]  }
 0x969   : > { %4665 = vrsqrt.f32 %v2289_v38  ;;  %v2290_v54 = vadd.f32 1e-05, %v2286_v46  ;;  %v4560_v38 = vld [vmem:[%s5378_s4 + $0x90] ss:$8 sps:$4 sm:$0xff]   ;;  %v4565_v46 = vld [vmem:[%s5378_s4 + $0xa4] ss:$8 sps:$4 sm:$0xff]  }
 0x96b   : > { %v4662_v56 = vpop.eup %4661  ;;  %4667 = vrsqrt.f32 %v2290_v54  ;;  %v4568_v54 = vld [vmem:[%s5378_s4 + $0xb4] ss:$8 sps:$4 sm:$0xff]  }
 0x96c   : > { %v2295_v31 = vmul.f32 %v4662_v56, %v5754_v36  ;;  %v2296_v7 = vmul.f32 %v4662_v56, %v5757_v37  ;;  %v4574_v56 = vld [vmem:[%s5378_s4 + $0xd4] ss:$8 sps:$4 sm:$0xff]  }
 0x96d   : > { %v4664_v59 = vpop.eup %4663 }
 0x96e   : > { %v2297_v60 = vmul.f32 %v4664_v59, %v5760_v40  ;;  %v2298_v39 = vmul.f32 %v4664_v59, %v5763_v42  ;;  %v2315_v45 = vmul.f32 %v2311_v55, %v2296_v7  ;;  %v2314_v48 = vmul.f32 %v2307_v47, %v2295_v31  ;;  %v4572_v31 = vld [vmem:[%s5378_s4 + $0xd0] ss:$8 sps:$4 sm:$0xff]   ;;  %v4577_v7 = vld [vmem:[%s5378_s4 + $0xe4] ss:$8 sps:$4 sm:$0xff]   ;;  %v4575_v59 = vld [vmem:[%s5378_s4 + $0xe0] ss:$8 sps:$4 sm:$0xff]  }
 0x970   : > { %v2317_v1 = vmul.f32 %v2311_v55, %v2298_v39  ;;  %v2316_v43 = vmul.f32 %v2307_v47, %v2297_v60  ;;  %v5836_v50 = vadd.f32 %v2330_v35, %v2315_v45  ;;  %v5840_v37 = vadd.f32 %v2326_v5, %v2314_v48  ;;  %v4583_v60 = vld [vmem:[%s5378_s4 + $0x104] ss:$8 sps:$4 sm:$0xff]   ;;  %v2409_v39 = vld [vmem:[%s5344_s15] sm:$0xf] }
 0x971   : > { %v2414_v45 = vrot.slane %v2409_v39, %v5471_v16  ;;  %v2422_v48 = vrot.slane %v2409_v39, %v855_v51 }
 0x972   : > { %v5838_v36 = vadd.f32 %v2330_v35, %v2317_v1  ;;  %v5842_v4 = vadd.f32 %v2326_v5, %v2316_v43  ;;  %v2418_v1 = vrot.slane %v2409_v39, %v5477_v18  ;;  %v2426_v43 = vrot.slane %v2409_v39, %v859_v52 }
 0x973   : > { %v4666_v17 = vpop.eup %4665 }
 0x974   : > { %v2342_v41 = vpack.c.bf16 %v5838_v36, %v5836_v50  ;;  %v2341_v40 = vpack.c.bf16 %v5842_v4, %v5840_v37  ;;  %v2300_v42 = vmul.f32 %v4666_v17, %v5777_v58  ;;  %v2299_v12 = vmul.f32 %v4666_v17, %v5774_v57  ;;  %v4536_v57 = vld [vmem:[%s5378_s4 + $0x10] ss:$8 sps:$4 sm:$0xff]  }
 0x975   : > { %v4668_v6 = vpop.eup %4667 }
 0x976   : > { %2783 = vmatprep.mubr.bf16.mxu1 %v2342_v41  ;;  %2836 = vmatprep.mubr.bf16.mxu0 %v2342_v41  ;;  %v2302_v11 = vmul.f32 %v4668_v6, %v5783_v2  ;;  %v2319_v13 = vmul.f32 %v2311_v55, %v2300_v42  ;;  %v2301_v15 = vmul.f32 %v4668_v6, %v5780_v63 }
 0x977   : > { %2784 = vmatmul.mubr.bf16.vlgmr.msra.gmra.mrb[32].mxu1 %v2341_v40  ;;  %2837 = vmatmul.mubr.bf16.vlgmr.msra.gmra.mrb[32].mxu0 %v2341_v40  ;;  %v2318_v30 = vmul.f32 %v2307_v47, %v2299_v12 }
 0x978   : > { %v2321_v58 = vmul.f32 %v2311_v55, %v2302_v11  ;;  %v2320_v33 = vmul.f32 %v2307_v47, %v2301_v15  ;;  %3278 = vmatpush1.bf16.msra.mxu1 %v4533_v3  ;;  %v5856_v19 = vadd.f32 %v2330_v35, %v2319_v13  ;;  %v4571_v47 = vld [vmem:[%s5378_s4 + $0xc4] ss:$8 sps:$4 sm:$0xff]   ;;  %v4569_v55 = vld [vmem:[%s5378_s4 + $0xc0] ss:$8 sps:$4 sm:$0xff]  }
 0x979   : > { %3279 = vmatprep.subr.bf16.mxu1 %v4538_v9  ;;  %v5860_v2 = vadd.f32 %v2326_v5, %v2318_v30 }
 0x97a   : > { %v5858_v20 = vadd.f32 %v2330_v35, %v2321_v58  ;;  %v5862_v63 = vadd.f32 %v2326_v5, %v2320_v33  ;;  %v4580_v5 = vld [vmem:[%s5378_s4 + $0xf4] ss:$8 sps:$4 sm:$0xff]   ;;  %v4578_v35 = vld [vmem:[%s5378_s4 + $0xf0] ss:$8 sps:$4 sm:$0xff]  }
 0x97c   : > { %v2344_v21 = vpack.c.bf16 %v5858_v20, %v5856_v19  ;;  %v2343_v22 = vpack.c.bf16 %v5862_v63, %v5860_v2  ;;  %3280 = vmatpush1.bf16.msra.mxu1 %v4536_v57 }
 0x97d   : > { %3281 = vmatprep.subr.bf16.mxu1 %v4541_v61 }
 0x97e   : > { %2793 = vmatprep.mubr.bf16.mxu1 %v2344_v21  ;;  %2846 = vmatprep.mubr.bf16.mxu0 %v2344_v21 }
 0x97f   : > { %2794 = vmatmul.mubr.bf16.gmra.mrb[36].mxu1 %v2343_v22  ;;  %2847 = vmatmul.mubr.bf16.gmra.mrb[36].mxu0 %v2343_v22 }
 0x980   : > { %3282 = vmatpush1.bf16.msra.mxu1 %v4539_v24 }
 0x981   : > { %3283 = vmatprep.subr.bf16.mxu1 %v4544_v0 }
 0x984   : > { %3284 = vmatpush1.bf16.msra.mxu1 %v4542_v44 }
 0x985   : > { %3285 = vmatprep.subr.bf16.mxu1 %v4547_v25 }
 0x988   : > { %3286 = vmatpush1.bf16.msra.mxu1 %v4545_v27 }
 0x989   : > { %3287 = vmatprep.subr.bf16.mxu1 %v4550_v62 }
 0x98c   : > { %3288 = vmatpush1.bf16.msra.mxu1 %v4548_v49 }
 0x98d   : > { %3289 = vmatprep.subr.bf16.mxu1 %v4553_v8 }
 0x990   : > { %3290 = vmatpush1.bf16.msra.mxu1 %v4551_v10 }
 0x991   : > { %3291 = vmatprep.subr.bf16.mxu1 %v4556_v26  ;;  %v4581_v26 = vld [vmem:[%s5378_s4 + $0x100] ss:$8 sps:$4 sm:$0xff]  }
 0x994   : > { %3292 = vmatpush1.bf16.msra.mxu1 %v4554_v28 }
 0x995   : > { %3293 = vmatprep.subr.bf16.mxu1 %v4559_v29 }
 0x998   : > { %3294 = vmatpush1.bf16.msra.mxu1 %v4557_v32 }
 0x999   : > { %3295 = vmatprep.subr.bf16.mxu1 %v4562_v34 }
 0x99c   : > { %3296 = vmatpush1.bf16.msra.mxu1 %v4560_v38  ;;  %v4586_v38 = vld [vmem:[%s5378_s4 + $0x114] ss:$8 sps:$4 sm:$0xff]  }
 0x99d   : > { %3297 = vmatprep.subr.bf16.mxu1 %v4565_v46 }
 0x9a0   : > { %3298 = vmatpush1.bf16.msra.mxu1 %v4563_v53 }
 0x9a1   : > { %3299 = vmatprep.subr.bf16.mxu1 %v4568_v54 }
 0x9a4   : > { %3300 = vmatpush1.bf16.msra.mxu1 %v4566_v23 }
 0x9a5   : > { %3301 = vmatprep.subr.bf16.mxu1 %v4571_v47 }
 0x9a8   : > { %3302 = vmatpush1.bf16.msra.mxu1 %v4569_v55 }
 0x9a9   : > { %3303 = vmatprep.subr.bf16.mxu1 %v4574_v56 }
 0x9ac   : > { %3304 = vmatpush1.bf16.msra.mxu1 %v4572_v31 }
 0x9ad   : > { %3305 = vmatprep.subr.bf16.mxu1 %v4577_v7 }
 0x9b0   : > { %3306 = vmatpush1.bf16.msra.mxu1 %v4575_v59 }
 0x9b1   : > { %3307 = vmatprep.subr.bf16.mxu1 %v4580_v5  ;;  %v4584_v5 = vld [vmem:[%s5378_s4 + $0x110] ss:$8 sps:$4 sm:$0xff]  }
 0x9b4   : > { %3308 = vmatpush1.bf16.msra.mxu1 %v4578_v35 }
 0x9b5   : > { %3330 = vmatprep.subr.bf16.mxu1 %v4583_v60 }
 0xa4a   : > { %v2785_v17 = vpop.f32.mrb[32].mxu1  ;;  %v2838_v41 = vpop.f32.mrb[32].mxu0 }
 0xa4b   : > { %v2786_v40 = vadd.f32 %v2785_v17, %v2414_v45  ;;  %v2839_v42 = vadd.f32 %v2838_v41, %v2422_v48  ;;  %v2787_v12 = vpop.f32.mrb[33].mxu1  ;;  %v2840_v3 = vpop.f32.mrb[33].mxu0  ;;  %v4589_v41 = vld [vmem:[%s5378_s4 + $0x124] ss:$8 sps:$4 sm:$0xff]  }
 0xa4c   : > { %v2788_v6 = vadd.f32 %v2787_v12, %v2418_v1  ;;  %v2841_v9 = vadd.f32 %v2840_v3, %v2426_v43  ;;  %v2789_v11 = vpop.f32.mrb[34].mxu1  ;;  %v2842_v13 = vpop.f32.mrb[34].mxu0 }
 0xa4d   : > { %v2790_v15 = vadd.f32 %v2789_v11, %v2414_v45  ;;  %v2843_v30 = vadd.f32 %v2842_v13, %v2422_v48  ;;  %v2791_v58 = vpop.f32.mrb[35].mxu1  ;;  %v2844_v33 = vpop.f32.mrb[35].mxu0  ;;  %v2857_v61 = vmax.f32 %v2786_v40, 0.0  ;;  %v2859_v14 = vmax.f32 %v2839_v42, 0.0  ;;  %v4590_v11 = vld [vmem:[%s5378_s4 + $0x130] ss:$8 sps:$4 sm:$0xff]  }
 0xa4e   : > { %v2792_v51 = vadd.f32 %v2791_v58, %v2418_v1  ;;  %v2845_v57 = vadd.f32 %v2844_v33, %v2426_v43  ;;  %v2858_v22 = vmax.f32 %v2788_v6, 0.0  ;;  %v2860_v24 = vmax.f32 %v2841_v9, 0.0  ;;  %v4587_v6 = vld [vmem:[%s5378_s4 + $0x120] ss:$8 sps:$4 sm:$0xff]   ;;  %v4592_v9 = vld [vmem:[%s5378_s4 + $0x134] ss:$8 sps:$4 sm:$0xff]  }
 0xa4f   : > { %v2861_v52 = vmax.f32 %v2790_v15, 0.0  ;;  %v2863_v21 = vmax.f32 %v2843_v30, 0.0  ;;  %v4595_v13 = vld [vmem:[%s5378_s4 + $0x144] ss:$8 sps:$4 sm:$0xff]   ;;  %v4593_v15 = vld [vmem:[%s5378_s4 + $0x140] ss:$8 sps:$4 sm:$0xff]  }
 0xa50   : > { %v2862_v0 = vmax.f32 %v2792_v51, 0.0  ;;  %v2864_v44 = vmax.f32 %v2845_v57, 0.0  ;;  %v4598_v30 = vld [vmem:[%s5378_s4 + $0x154] ss:$8 sps:$4 sm:$0xff]   ;;  %v4596_v58 = vld [vmem:[%s5378_s4 + $0x150] ss:$8 sps:$4 sm:$0xff]  }
 0xa51   : > { %v2873_v25 = vpack.c.bf16 %v2861_v52, %v2857_v61  ;;  %v5903_v27 = vpack.c.bf16 %v2863_v21, %v2859_v14  ;;  %v4601_v33 = vld [vmem:[%s5378_s4 + $0x164] ss:$8 sps:$4 sm:$0xff]   ;;  %v4599_v51 = vld [vmem:[%s5378_s4 + $0x160] ss:$8 sps:$4 sm:$0xff]   ;;  %v4604_v57 = vld [vmem:[%s5378_s4 + $0x174] ss:$8 sps:$4 sm:$0xff]  }
 0xa52   : > { %v2874_v62 = vpack.c.bf16 %v2862_v0, %v2858_v22  ;;  %v2876_v49 = vpack.c.bf16 %v2864_v44, %v2860_v24  ;;  %v2795_v8 = vpop.f32.mrb[36].mxu1  ;;  %v2848_v10 = vpop.f32.mrb[36].mxu0  ;;  %v4602_v61 = vld [vmem:[%s5378_s4 + $0x170] ss:$8 sps:$4 sm:$0xff]   ;;  %v4607_v14 = vld [vmem:[%s5378_s4 + $0x184] ss:$8 sps:$4 sm:$0xff]  }
 0xa53   : > { %v2796_v28 = vadd.f32 %v2795_v8, %v2414_v45  ;;  %v2849_v29 = vadd.f32 %v2848_v10, %v2422_v48  ;;  %v2797_v32 = vpop.f32.mrb[37].mxu1  ;;  %v2850_v34 = vpop.f32.mrb[37].mxu0  ;;  %v4605_v52 = vld [vmem:[%s5378_s4 + $0x180] ss:$8 sps:$4 sm:$0xff]   ;;  %v4610_v21 = vld [vmem:[%s5378_s4 + $0x194] ss:$8 sps:$4 sm:$0xff]  }
 0xa54   : > { %v2798_v46 = vadd.f32 %v2797_v32, %v2418_v1  ;;  %v2851_v53 = vadd.f32 %v2850_v34, %v2426_v43  ;;  %v2799_v54 = vpop.f32.mrb[38].mxu1  ;;  %v2852_v23 = vpop.f32.mrb[38].mxu0  ;;  %3309 = vmatprep.mubr.bf16.mxu1 %v2874_v62  ;;  %v4608_v22 = vld [vmem:[%s5378_s4 + $0x190] ss:$8 sps:$4 sm:$0xff]   ;;  %v4613_v24 = vld [vmem:[%s5378_s4 + $0x1a4] ss:$8 sps:$4 sm:$0xff]  }
 0xa55   : > { %v2800_v47 = vadd.f32 %v2799_v54, %v2414_v45  ;;  %v2853_v55 = vadd.f32 %v2852_v23, %v2422_v48  ;;  %v2801_v56 = vpop.f32.mrb[39].mxu1  ;;  %v2854_v31 = vpop.f32.mrb[39].mxu0  ;;  %3310 = vmatmul.mubr.bf16.vlgmr.msra.gmra.mrb[40].mxu1 %v2873_v25  ;;  %v2865_v35 = vmax.f32 %v2796_v28, 0.0  ;;  %v2867_v60 = vmax.f32 %v2849_v29, 0.0  ;;  %v4611_v0 = vld [vmem:[%s5378_s4 + $0x1a0] ss:$8 sps:$4 sm:$0xff]  }
 0xa56   : > { %v2802_v7 = vadd.f32 %v2801_v56, %v2418_v1  ;;  %v2855_v59 = vadd.f32 %v2854_v31, %v2426_v43  ;;  %3331 = vmatpush1.bf16.msra.mxu1 %v4581_v26  ;;  %v2866_v40 = vmax.f32 %v2798_v46, 0.0  ;;  %v2868_v42 = vmax.f32 %v2851_v53, 0.0  ;;  %v4616_v44 = vld [vmem:[%s5378_s4 + $0x1b4] ss:$8 sps:$4 sm:$0xff]   ;;  %v4614_v25 = vld [vmem:[%s5378_s4 + $0x1b0] ss:$8 sps:$4 sm:$0xff]  }
 0xa57   : > { %v2869_v39 = vmax.f32 %v2800_v47, 0.0  ;;  %v2871_v17 = vmax.f32 %v2853_v55, 0.0  ;;  %3332 = vmatprep.subr.bf16.mxu1 %v4586_v38  ;;  %v4619_v62 = vld [vmem:[%s5378_s4 + $0x1c4] ss:$8 sps:$4 sm:$0xff]   ;;  %v4622_v8 = vld [vmem:[%s5378_s4 + $0x1d4] ss:$8 sps:$4 sm:$0xff]  }
 0xa58   : > { %v2870_v45 = vmax.f32 %v2802_v7, 0.0  ;;  %v2872_v48 = vmax.f32 %v2855_v59, 0.0  ;;  %v4620_v10 = vld [vmem:[%s5378_s4 + $0x1d0] ss:$8 sps:$4 sm:$0xff]   ;;  %v4625_v26 = vld [vmem:[%s5378_s4 + $0x1e4] ss:$8 sps:$4 sm:$0xff]  }
 0xa59   : > { %v2877_v12 = vpack.c.bf16 %v2869_v39, %v2865_v35  ;;  %v5909_v1 = vpack.c.bf16 %v2871_v17, %v2867_v60  ;;  %v4623_v28 = vld [vmem:[%s5378_s4 + $0x1e0] ss:$8 sps:$4 sm:$0xff]   ;;  %v4628_v29 = vld [vmem:[%s5378_s4 + $0x1f4] ss:$8 sps:$4 sm:$0xff]   ;;  %v4626_v32 = vld [vmem:[%s5378_s4 + $0x1f0] ss:$8 sps:$4 sm:$0xff]  }
 0xa5a   : > { %v2878_v43 = vpack.c.bf16 %v2870_v45, %v2866_v40  ;;  %v2880_v3 = vpack.c.bf16 %v2872_v48, %v2868_v42  ;;  %3333 = vmatpush1.bf16.msra.mxu1 %v4584_v5  ;;  %v2945_v34 = vld [vmem:[%s700_s9] sm:$0x3] }
 0xa5b   : > { %3334 = vmatprep.subr.bf16.mxu1 %v4589_v41  ;;  %v2950_v38 = vrot.slane %v2945_v34, %v5471_v16  ;;  %v2954_v46 = vrot.slane %v2945_v34, %v5477_v18 }
 0xa5c   : > { %3319 = vmatprep.mubr.bf16.mxu1 %v2878_v43 }
 0xa5d   : > { %3320 = vmatmul.mubr.bf16.gmra.mrb[44].mxu1 %v2877_v12 }
 0xa5e   : > { %3335 = vmatpush1.bf16.msra.mxu1 %v4587_v6  ;;  %3362 = vmatprep.mubr.bf16.mxu1 %v2876_v49  ;;  %v4617_v49 = vld [vmem:[%s5378_s4 + $0x1c0] ss:$8 sps:$4 sm:$0xff]  }
 0xa5f   : > { %3336 = vmatprep.subr.bf16.mxu1 %v4592_v9 }
 0xa62   : > { %3337 = vmatpush1.bf16.msra.mxu1 %v4590_v11 }
 0xa63   : > { %3338 = vmatprep.subr.bf16.mxu1 %v4595_v13 }
 0xa66   : > { %3339 = vmatpush1.bf16.msra.mxu1 %v4593_v15 }
 0xa67   : > { %3340 = vmatprep.subr.bf16.mxu1 %v4598_v30 }
 0xa6a   : > { %3341 = vmatpush1.bf16.msra.mxu1 %v4596_v58 }
 0xa6b   : > { %3342 = vmatprep.subr.bf16.mxu1 %v4601_v33 }
 0xa6e   : > { %3343 = vmatpush1.bf16.msra.mxu1 %v4599_v51 }
 0xa6f   : > { %3344 = vmatprep.subr.bf16.mxu1 %v4604_v57 }
 0xa72   : > { %3345 = vmatpush1.bf16.msra.mxu1 %v4602_v61 }
 0xa73   : > { %3346 = vmatprep.subr.bf16.mxu1 %v4607_v14 }
 0xa76   : > { %3347 = vmatpush1.bf16.msra.mxu1 %v4605_v52 }
 0xa77   : > { %3348 = vmatprep.subr.bf16.mxu1 %v4610_v21 }
 0xa7a   : > { %3349 = vmatpush1.bf16.msra.mxu1 %v4608_v22 }
 0xa7b   : > { %3350 = vmatprep.subr.bf16.mxu1 %v4613_v24 }
 0xa7e   : > { %3351 = vmatpush1.bf16.msra.mxu1 %v4611_v0 }
 0xa7f   : > { %3352 = vmatprep.subr.bf16.mxu1 %v4616_v44 }
 0xa82   : > { %3353 = vmatpush1.bf16.msra.mxu1 %v4614_v25 }
 0xa83   : > { %3354 = vmatprep.subr.bf16.mxu1 %v4619_v62 }
 0xa86   : > { %3355 = vmatpush1.bf16.msra.mxu1 %v4617_v49 }
 0xa87   : > { %3356 = vmatprep.subr.bf16.mxu1 %v4622_v8 }
 0xa8a   : > { %3357 = vmatpush1.bf16.msra.mxu1 %v4620_v10 }
 0xa8b   : > { %3358 = vmatprep.subr.bf16.mxu1 %v4625_v26 }
 0xa8e   : > { %3359 = vmatpush1.bf16.msra.mxu1 %v4623_v28 }
 0xa8f   : > { %3360 = vmatprep.subr.bf16.mxu1 %v4628_v29 }
 0xa92   : > { %3361 = vmatpush1.bf16.msra.mxu1 %v4626_v32 }
 0xa95   : > { %3363 = vmatmul.mubr.bf16.vlgmr.msra.gmra.mrb[40].mxu1 %v5903_v27 }
 0xa96   : > { %3372 = vmatprep.mubr.bf16.mxu1 %v2880_v3 }
 0xa9d   : > { %3373 = vmatmul.mubr.bf16.gmra.mrb[44].mxu1 %v5909_v1 }
 0xb68   : > { %v3364_v53 = vpop.f32.mrb[40].mxu1 }
 0xb69   : > { %v4126_v54 = vadd.f32 %v3364_v53, %v2950_v38  ;;  %v3366_v23 = vpop.f32.mrb[41].mxu1 }
 0xb6a   : > { %v4127_v47 = vadd.f32 %v3366_v23, %v2954_v46  ;;  %v3368_v55 = vpop.f32.mrb[42].mxu1 }
 0xb6b   : > { %v3383_v56 = vadd.f32 %v4126_v54, %v5840_v37  ;;  %v4128_v27 = vadd.f32 %v3368_v55, %v2950_v38  ;;  %v3370_v31 = vpop.f32.mrb[43].mxu1 }
 0xb6c   : > { %v3384_v7 = vadd.f32 %v4127_v47, %v5836_v50  ;;  %v4129_v59 = vadd.f32 %v3370_v31, %v2954_v46  ;;  %v3391_v47 = vld [vmem:[%s704_s8] sm:$0x3] }
 0xb6d   : > { %v3385_v5 = vadd.f32 %v4128_v27, %v5842_v4  ;;  %v3392_v27 = vld [vmem:[%s708_s17] sm:$0x3] }
 0xb6e   : > { %v3386_v35 = vadd.f32 %v4129_v59, %v5838_v36  ;;  %v3393_v60 = vadd.f32 %v3384_v7, %v3383_v56  ;;  %v3465_v59 = vrot.slane %v3391_v47, %v5477_v18 }
 0xb70   : > { %v3374_v39 = vpop.f32.mrb[44].mxu1  ;;  %3394 = vadd.xlane.f32.xlu0 %v3393_v60  ;;  %v3396_v17 = vadd.f32 %v3386_v35, %v3385_v5  ;;  %v3484_v60 = vrot.slane %v3392_v27, %v5477_v18 }
 0xb71   : > { %v4130_v41 = vadd.f32 %v3374_v39, %v2950_v38  ;;  %v3376_v40 = vpop.f32.mrb[45].mxu1 }
 0xb72   : > { %v4131_v42 = vadd.f32 %v3376_v40, %v2954_v46  ;;  %v3378_v45 = vpop.f32.mrb[46].mxu1  ;;  %3397 = vadd.xlane.f32.xlu1 %v3396_v17 }
 0xb73   : > { %v3387_v37 = vadd.f32 %v4130_v41, %v5860_v2  ;;  %v4132_v48 = vadd.f32 %v3378_v45, %v2950_v38  ;;  %v3380_v12 = vpop.f32.mrb[47].mxu1 }
 0xb74   : > { %v3388_v50 = vadd.f32 %v4131_v42, %v5856_v19  ;;  %v4133_v1 = vadd.f32 %v3380_v12, %v2954_v46 }
 0xb75   : > { %v3389_v4 = vadd.f32 %v4132_v48, %v5862_v63 }
 0xb76   : > { %v3390_v36 = vadd.f32 %v4133_v1, %v5858_v20  ;;  %v3399_v43 = vadd.f32 %v3388_v50, %v3387_v37 }
 0xb78   : > { %3400 = vadd.xlane.f32.xlu0 %v3399_v43  ;;  %v3402_v3 = vadd.f32 %v3390_v36, %v3389_v4 }
 0xb7a   : > { %3403 = vadd.xlane.f32.xlu1 %v3402_v3 }
 0xbfd   : > { %v3395_v6 = vpop.xlane.xlu0 %3394 }
 0xbfe   : > { %v3405_v9 = vmul.f32 0.00390625, %v3395_v6 }
 0xbff   : > { %v3398_v11 = vpop.xlane.xlu1 %3397 }
 0xc00   : > { %v3409_v13 = vsub.f32 %v3383_v56, %v3405_v9  ;;  %v3410_v15 = vsub.f32 %v3384_v7, %v3405_v9  ;;  %v3406_v30 = vmul.f32 0.00390625, %v3398_v11  ;;  %v3461_v7 = vrot.slane %v3391_v47, %v5471_v16 }
 0xc02   : > { %v3411_v2 = vsub.f32 %v3385_v5, %v3406_v30  ;;  %v3412_v58 = vsub.f32 %v3386_v35, %v3406_v30  ;;  %v3417_v33 = vmul.f32 %v3409_v13, %v3409_v13  ;;  %v3418_v51 = vmul.f32 %v3410_v15, %v3410_v15 }
 0xc03   : > { %v3480_v35 = vrot.slane %v3392_v27, %v5471_v16 }
 0xc04   : > { %v3425_v19 = vadd.f32 %v3418_v51, %v3417_v33  ;;  %v3419_v57 = vmul.f32 %v3411_v2, %v3411_v2  ;;  %v3420_v61 = vmul.f32 %v3412_v58, %v3412_v58 }
 0xc05   : > { %v3401_v63 = vpop.xlane.xlu0 %3400 }
 0xc06   : > { %v3407_v14 = vmul.f32 0.00390625, %v3401_v63  ;;  %3426 = vadd.xlane.f32.xlu0 %v3425_v19  ;;  %v3428_v20 = vadd.f32 %v3420_v61, %v3419_v57 }
 0xc07   : > { %v3404_v52 = vpop.xlane.xlu1 %3403 }
 0xc08   : > { %v3413_v21 = vsub.f32 %v3387_v37, %v3407_v14  ;;  %v3414_v22 = vsub.f32 %v3388_v50, %v3407_v14  ;;  %v3408_v24 = vmul.f32 0.00390625, %v3404_v52  ;;  %3429 = vadd.xlane.f32.xlu1 %v3428_v20 }
 0xc0a   : > { %v3415_v0 = vsub.f32 %v3389_v4, %v3408_v24  ;;  %v3416_v44 = vsub.f32 %v3390_v36, %v3408_v24  ;;  %v3421_v25 = vmul.f32 %v3413_v21, %v3413_v21  ;;  %v3422_v62 = vmul.f32 %v3414_v22, %v3414_v22 }
 0xc0c   : > { %v3431_v49 = vadd.f32 %v3422_v62, %v3421_v25  ;;  %v3423_v8 = vmul.f32 %v3415_v0, %v3415_v0  ;;  %v3424_v10 = vmul.f32 %v3416_v44, %v3416_v44 }
 0xc0e   : > { %3432 = vadd.xlane.f32.xlu0 %v3431_v49  ;;  %v3434_v26 = vadd.f32 %v3424_v10, %v3423_v8 }
 0xc10   : > { %3435 = vadd.xlane.f32.xlu1 %v3434_v26 }
 0xc93   : > { %v3427_v28 = vpop.xlane.xlu0 %3426 }
 0xc94   : > { %v3437_v29 = vmul.f32 0.00390625, %v3427_v28 }
 0xc95   : > { %v3430_v32 = vpop.xlane.xlu1 %3429 }
 0xc96   : > { %v3441_v34 = vadd.f32 1e-05, %v3437_v29  ;;  %v3438_v38 = vmul.f32 0.00390625, %v3430_v32 }
 0xc98   : > { %4669 = vrsqrt.f32 %v3441_v34  ;;  %v3442_v46 = vadd.f32 1e-05, %v3438_v38 }
 0xc9a   : > { %4671 = vrsqrt.f32 %v3442_v46 }
 0xc9b   : > { %v3433_v53 = vpop.xlane.xlu0 %3432 }
 0xc9c   : > { %v3439_v54 = vmul.f32 0.00390625, %v3433_v53 }
 0xc9d   : > { %v3436_v23 = vpop.xlane.xlu1 %3435 }
 0xc9e   : > { %v3443_v55 = vadd.f32 1e-05, %v3439_v54  ;;  %v3440_v56 = vmul.f32 0.00390625, %v3436_v23 }
 0xca0   : > { %4673 = vrsqrt.f32 %v3443_v55  ;;  %v3444_v31 = vadd.f32 1e-05, %v3440_v56 }
 0xca2   : > { %v4670_v5 = vpop.eup %4669  ;;  %4675 = vrsqrt.f32 %v3444_v31 }
 0xca3   : > { %v3449_v39 = vmul.f32 %v4670_v5, %v3409_v13  ;;  %v3450_v17 = vmul.f32 %v4670_v5, %v3410_v15 }
 0xca4   : > { %v4672_v41 = vpop.eup %4671 }
 0xca5   : > { %v3468_v40 = vmul.f32 %v3461_v7, %v3449_v39  ;;  %v3469_v42 = vmul.f32 %v3465_v59, %v3450_v17  ;;  %v3451_v45 = vmul.f32 %v4672_v41, %v3411_v2  ;;  %v3452_v37 = vmul.f32 %v4672_v41, %v3412_v58 }
 0xca7   : > { %v3487_v48 = vadd.f32 %v3480_v35, %v3468_v40  ;;  %v3488_v12 = vadd.f32 %v3484_v60, %v3469_v42  ;;  %v3470_v50 = vmul.f32 %v3461_v7, %v3451_v45  ;;  %v3471_v1 = vmul.f32 %v3465_v59, %v3452_v37 }
 0xca9   : > { %3495 = vst [vmem:[#allocation2] sm:$0xff] %v3487_v48  ;;  %3496 = vst [vmem:[#allocation2 + $0x8] sm:$0xff] %v3488_v12  ;;  %v3489_v4 = vadd.f32 %v3480_v35, %v3470_v50  ;;  %v3490_v36 = vadd.f32 %v3484_v60, %v3471_v1 }
 0xcaa   : > { %v4674_v43 = vpop.eup %4673  ;;  %3507 = vst [vmem:[#allocation13] sm:$0xff] (!%p4053_p9), %v3487_v48  ;;  %3508 = vst [vmem:[#allocation13 + $0x8] sm:$0xff] (!%p4053_p9), %v3488_v12 }
 0xcab   : > { %3497 = vst [vmem:[#allocation2 + $0x10] sm:$0xff] %v3489_v4  ;;  %3498 = vst [vmem:[#allocation2 + $0x18] sm:$0xff] %v3490_v36  ;;  %v3453_v16 = vmul.f32 %v4674_v43, %v3413_v21  ;;  %v3454_v18 = vmul.f32 %v4674_v43, %v3414_v22 }
 0xcac   : > { %v4676_v3 = vpop.eup %4675  ;;  %3509 = vst [vmem:[#allocation13 + $0x10] sm:$0xff] (!%p4053_p9), %v3489_v4  ;;  %3510 = vst [vmem:[#allocation13 + $0x18] sm:$0xff] (!%p4053_p9), %v3490_v36 }
 0xcad   : > { %v3472_v6 = vmul.f32 %v3461_v7, %v3453_v16  ;;  %v3473_v9 = vmul.f32 %v3465_v59, %v3454_v18  ;;  %v3455_v11 = vmul.f32 %v4676_v3, %v3415_v0  ;;  %v3456_v13 = vmul.f32 %v4676_v3, %v3416_v44  ;;  %3506 = sbr.rel (%p4053_p9) target bundleno = 3253 (0xcb5), region = 100 }
 0xcaf   : > { %v3491_v15 = vadd.f32 %v3480_v35, %v3472_v6  ;;  %v3492_v30 = vadd.f32 %v3484_v60, %v3473_v9  ;;  %v3474_v2 = vmul.f32 %v3461_v7, %v3455_v11  ;;  %v3475_v58 = vmul.f32 %v3465_v59, %v3456_v13 }
 0xcb1   : > { %3499 = vst [vmem:[#allocation2 + $0x20] sm:$0xff] %v3491_v15  ;;  %3500 = vst [vmem:[#allocation2 + $0x28] sm:$0xff] %v3492_v30  ;;  %v3493_v33 = vadd.f32 %v3480_v35, %v3474_v2  ;;  %v3494_v51 = vadd.f32 %v3484_v60, %v3475_v58 }
 0xcb2   : > { %3511 = vst [vmem:[#allocation13 + $0x20] sm:$0xff] (!%p4053_p9), %v3491_v15  ;;  %3512 = vst [vmem:[#allocation13 + $0x28] sm:$0xff] (!%p4053_p9), %v3492_v30 }
 0xcb3   : > { %3501 = vst [vmem:[#allocation2 + $0x30] sm:$0xff] %v3493_v33  ;;  %3502 = vst [vmem:[#allocation2 + $0x38] sm:$0xff] %v3494_v51 }
 0xcb4   : > { %3513 = vst [vmem:[#allocation13 + $0x30] sm:$0xff] %v3493_v33  ;;  %3514 = vst [vmem:[#allocation13 + $0x38] sm:$0xff] %v3494_v51 }
 0xcb5 PF: > { %s6090_s30 = sld [smem:[#allocation27_spill]]  ;;  %s4969_s8 = smov [#allocation13]  }
 0xcb6   : > { %s3525_s17 = sshll.u32 %s4969_s8, 4  ;;  %s3526_s17 = int_to_ptr.vmem [resolvable:$true] %s3525_s17 }
 0xcb7   : > { %s4861_s26 = scalar_lea.vmem %s3526_s17, 1024  ;;  %p4868_p1 = scmp.lt.s32.totalorder %s3526_s17, %s3526_s17 }
 0xcb8   : > { %p4862_p12 = scmp.ne.s32.totalorder %s3526_s17, %s4861_s26  ;;  %p4869_p2 = scmp.lt.s32.totalorder %s4861_s26, %s4861_s26 }
 0xcba   : > { %p4870_p3 = por %p4869_p2, %p4868_p1 }
 0xcbb   : > { %p4183_p5 = scmp.eq.s32.totalorder %s6090_s30, 1 }
 0xcbd   : > { %p4863_p0 = pnand %p4862_p12, %p4183_p5 }
 0xcbf   : > { %p4864_p10 = pneg %p4863_p0 }
 0xcc1   : > { %p4871_p13 = pnand %p4870_p3, %p4864_p10 }
 0xcc3   : > { %4874 = shalt.err (!%p4871_p13)
}
 0xcc4   : > { %s6091_s14 = sld [smem:[#allocation43_spill]] }
 0xcca   : > { %s4875_s21 = scalar_lea.hbm %s6091_s14, 1024 }
 0xccb   : > { %p4876_p4 = scmp.ne.s32.totalorder %s6091_s14, %s4875_s21  ;;  %p4881_p11 = scmp.lt.u32.totalorder %s4875_s21, %s6091_s14 }
 0xccd   : > { %p4877_p8 = pnand %p4876_p4, %p4183_p5 }
 0xccf   : > { %p4878_p7 = pneg %p4877_p8 }
 0xcd1   : > { %p4883_p6 = pnand %p4881_p11, %p4878_p7 }
 0xcd3   : > { %4886 = shalt.err (!%p4883_p6)
}
 0xcd4   : > { %s4970_s11 = smov 256   ;;  %s4971_s22 = smov 16  }
 0xcd5   : > { %4162 = dma.vmem_to_hbm [thread:$0]  (%p4183_p5), %s3526_s17, 1024, %s6091_s14, [#allocation6], %s4970_s11, %s4970_s11, %s4971_s22  }
 0xcd6   : > { %4928 = dma.done.wait (%p4183_p5), [#allocation6], 1024  }
 0xcd7   : > { %4930 = vsyncadd (%p4183_p5), [#allocation6], 4294966272 }
 0xcd8 PF: > { %s6092_s0 = sld [smem:[#allocation26_spill]]  ;;  %s6093_s25 = sld [smem:[#allocation23_spill]] }
 0xcd9   : > { %s6094_s26 = sld [smem:[#allocation24_spill]]  ;;  %s6095_s27 = sld [smem:[#allocation29_spill]] }
 0xcda   : > { %s6096_s28 = sld [smem:[#allocation25_spill]]  ;;  %s6097_s29 = sld [smem:[#allocation28_spill]] }
 0xcde   : > { %s33_s30 = sadd.s32 1, %s6092_s0  }
 0xcdf   : > { %p30_p9 = scmp.ge.s32.totalorder %s33_s30, 4  }
 0xce1   :  { %32 = sbr.rel (!%p30_p9) target bundleno = 24 (0x18), region = 188 }
 0xce8   :  { %3541 = vsyncpa [#allocation5], 1 }
 0xce9   :  { %3543 = vsyncpa [#allocation5 + $0x1], 1 }
 0xcea   :  { %3544 = vsyncpa [#allocation8], 1 }
 0xceb   :  { %3546 = vsyncpa [#allocation8 + $0x1], 1 }
 0xcec   :  { %3547 = vsyncpa [#allocation11], 1 }
 0xced   :  { %3549 = vsyncpa [#allocation11 + $0x1], 1 }
 0xcee   :  { %3550 = vsyncpa [#allocation6], 1 }
 0xcef   :  { %3552 = vsyncpa [#allocation6 + $0x1], 1 }
 0xcf0   :  { %3553 = vsyncmov [#allocation3] }
 0xcf3   :  { %s3554_s13 = vpop.sfrf %3553 }
 0xcf4   :  { %p4058_p5 = scmp.ne.s32.totalorder %s3554_s13, 0 }
 0xcf6   :  { %3558 = shalt.err (%p4058_p5)  }

</bundles_post_ra>
